<compile_context>
chip_gen: v6e
topology: v6e:2x2x1
jax: 0.10.0
libtpu: 0.0.40
codegen_flags: <defaults>
</compile_context>

<pallas_src>
import functools

import jax
import jax.numpy as jnp
from jax.experimental import pallas as pl
from jax.experimental.pallas import tpu as pltpu


# ----------------------------------------------------------------------------
# Tile helpers
# ----------------------------------------------------------------------------

def _pick_tile(dim, prefs):
    """Largest preferred tile that exactly divides dim; else the full dim."""
    for p in prefs:
        if p <= dim and dim % p == 0:
            return p
    return dim


def _vmem_limit(bytes_needed):
    """Raise the scoped VMEM limit when needed; stay within v7x's 64 MiB."""
    return int(min(64 * 1024 * 1024, max(32 * 1024 * 1024, 2 * bytes_needed)))


# ----------------------------------------------------------------------------
# Tiled linear (matmul + bias (+ relu)) kernel
#   - bf16 operands, f32 accumulation
#   - accumulates directly into the K-invariant output block when out dtype is
#     f32; uses an f32 VMEM scratch only for narrower output dtypes.
# ----------------------------------------------------------------------------

def _linear_kernel(x_ref, w_ref, b_ref, o_ref, *scratch, relu):
    acc_ref = scratch[0] if scratch else o_ref

    @pl.when(pl.program_id(2) == 0)
    def _():
        acc_ref[...] = jnp.zeros_like(acc_ref)

    acc_ref[...] += jnp.dot(x_ref[...], w_ref[...],
                            preferred_element_type=jnp.float32)

    @pl.when(pl.program_id(2) == pl.num_programs(2) - 1)
    def _():
        y = acc_ref[...] + b_ref[...]
        if relu:
            y = jnp.maximum(y, 0.0)
        o_ref[...] = y.astype(o_ref.dtype)


def linear(x2d, w, b, relu=False, out_dtype=jnp.float32):
    """x2d: (M, K); w: (K, N); b: (N,) -> (M, N) in out_dtype (f32 accumulate)."""
    M, K = x2d.shape
    N = w.shape[1]
    xb = x2d.astype(jnp.bfloat16)
    wb = w.astype(jnp.bfloat16)

    tm = _pick_tile(M, (512, 256, 128))
    tn = _pick_tile(N, (1024, 512, 256, 128))
    tk = _pick_tile(K, (512, 256, 128))
    grid = (M // tm, N // tn, K // tk)

    use_scratch = jnp.dtype(out_dtype) != jnp.dtype(jnp.float32)
    scratch = [pltpu.VMEM((tm, tn), jnp.float32)] if use_scratch else []

    # double-buffered bf16 inputs + f32 output/accumulator footprint estimate
    footprint = 2 * 2 * (tm * tk + tk * tn) + 3 * 4 * tm * tn + 4 * tn

    kern = functools.partial(_linear_kernel, relu=relu)
    cost = pl.CostEstimate(flops=2 * M * N * K, transcendentals=0,
                           bytes_accessed=2 * (M * K + K * N) + 4 * M * N)
    return pl.pallas_call(
        kern,
        out_shape=jax.ShapeDtypeStruct((M, N), out_dtype),
        grid=grid,
        in_specs=[
            pl.BlockSpec((tm, tk), lambda i, j, k: (i, k)),
            pl.BlockSpec((tk, tn), lambda i, j, k: (k, j)),
            pl.BlockSpec((1, tn), lambda i, j, k: (0, j)),
        ],
        out_specs=pl.BlockSpec((tm, tn), lambda i, j, k: (i, j)),
        scratch_shapes=scratch,
        compiler_params=pltpu.CompilerParams(
            dimension_semantics=("parallel", "parallel", "arbitrary"),
            vmem_limit_bytes=_vmem_limit(footprint)),
        cost_estimate=cost,
    )(xb, wb, b.reshape(1, N).astype(jnp.float32))


# ----------------------------------------------------------------------------
# Linear + bias + residual-add + LayerNorm, fused (LN in the last-K finalize).
# Valid because the output tile spans the full feature dim (tn == d_model).
# ----------------------------------------------------------------------------

def _linear_res_ln_kernel(x_ref, w_ref, b_ref, r_ref, g_ref, bt_ref, o_ref, *, eps):
    @pl.when(pl.program_id(1) == 0)
    def _():
        o_ref[...] = jnp.zeros_like(o_ref)

    o_ref[...] += jnp.dot(x_ref[...], w_ref[...],
                          preferred_element_type=jnp.float32)

    @pl.when(pl.program_id(1) == pl.num_programs(1) - 1)
    def _():
        y = o_ref[...] + b_ref[...] + r_ref[...]
        mean = jnp.mean(y, axis=-1, keepdims=True)
        yc = y - mean
        var = jnp.mean(yc * yc, axis=-1, keepdims=True)
        o_ref[...] = yc * jax.lax.rsqrt(var + eps) * g_ref[...] + bt_ref[...]


def linear_res_ln(x2d, w, b, residual, gamma, beta, eps=1e-5):
    """LayerNorm(residual + (x2d @ w + b)) -> (M, N) float32."""
    M, K = x2d.shape
    N = w.shape[1]
    xb = x2d.astype(jnp.bfloat16)
    wb = w.astype(jnp.bfloat16)

    tm = _pick_tile(M, (512, 256, 128))
    tk = _pick_tile(K, (512, 256, 128))
    grid = (M // tm, K // tk)

    footprint = 2 * 2 * (tm * tk + tk * N) + 4 * (3 * tm * N + 3 * N)
    cost = pl.CostEstimate(flops=2 * M * N * K, transcendentals=0,
                           bytes_accessed=2 * (M * K + K * N) + 4 * (3 * M * N))

    return pl.pallas_call(
        functools.partial(_linear_res_ln_kernel, eps=eps),
        out_shape=jax.ShapeDtypeStruct((M, N), jnp.float32),
        grid=grid,
        in_specs=[
            pl.BlockSpec((tm, tk), lambda i, k: (i, k)),
            pl.BlockSpec((tk, N), lambda i, k: (k, 0)),
            pl.BlockSpec((1, N), lambda i, k: (0, 0)),
            pl.BlockSpec((tm, N), lambda i, k: (i, 0)),
            pl.BlockSpec((1, N), lambda i, k: (0, 0)),
            pl.BlockSpec((1, N), lambda i, k: (0, 0)),
        ],
        out_specs=pl.BlockSpec((tm, N), lambda i, k: (i, 0)),
        compiler_params=pltpu.CompilerParams(
            dimension_semantics=("parallel", "arbitrary"),
            vmem_limit_bytes=_vmem_limit(footprint)),
        cost_estimate=cost,
    )(xb, wb, b.reshape(1, N).astype(jnp.float32), residual,
      gamma.reshape(1, N), beta.reshape(1, N))


# ----------------------------------------------------------------------------
# Plain LayerNorm (final norm of the decoder stack)
# ----------------------------------------------------------------------------

def _ln_kernel(x_ref, g_ref, b_ref, o_ref, *, eps):
    x = x_ref[...]
    mean = jnp.mean(x, axis=-1, keepdims=True)
    xc = x - mean
    var = jnp.mean(xc * xc, axis=-1, keepdims=True)
    o_ref[...] = xc * jax.lax.rsqrt(var + eps) * g_ref[...] + b_ref[...]


def layernorm(x2d, gamma, beta, eps=1e-5):
    M, D = x2d.shape
    # VMEM-aware row tile (2 f32 streams, double-buffered) -> ~8 MiB budget.
    budget = 8 * 1024 * 1024
    prefs = tuple(t for t in (1024, 512, 256, 128, 64, 32, 16, 8)
                  if t * D * 4 * 4 <= budget)
    tm = _pick_tile(M, prefs if prefs else (8,))
    grid = (M // tm,)
    row_spec = pl.BlockSpec((tm, D), lambda i: (i, 0))
    vec_spec = pl.BlockSpec((1, D), lambda i: (0, 0))
    return pl.pallas_call(
        functools.partial(_ln_kernel, eps=eps),
        out_shape=jax.ShapeDtypeStruct((M, D), jnp.float32),
        grid=grid,
        in_specs=[row_spec, vec_spec, vec_spec],
        out_specs=row_spec,
        compiler_params=pltpu.CompilerParams(dimension_semantics=("parallel",)),
    )(x2d, gamma.reshape(1, D), beta.reshape(1, D))


# ----------------------------------------------------------------------------
# Multi-head attention kernel: grid over batch, heads handled in-kernel via
# static lane slices. q/k/v are read straight out of the fused qkv / kv arrays
# via lane-block-selecting index maps (no HBM slice copies).
# ----------------------------------------------------------------------------

def _mha_kernel(q_ref, k_ref, v_ref, o_ref, *, nhead, scale):
    # q_ref: (1, L, E), k_ref/v_ref: (1, S, E), o_ref: (1, L, E) (bf16)
    E = q_ref.shape[-1]
    dh = E // nhead
    outs = []
    for h in range(nhead):          # static unroll; heads stay in VMEM
        sl = slice(h * dh, (h + 1) * dh)
        q = q_ref[0, :, sl]                                # (L, dh) bf16
        k = k_ref[0, :, sl]                                # (S, dh) bf16
        v = v_ref[0, :, sl]                                # (S, dh) bf16
        # contract over dh without materializing k.T; f32 accumulate
        s = jax.lax.dot_general(q, k, (((1,), (1,)), ((), ())),
                                preferred_element_type=jnp.float32) * scale
        s = s - jnp.max(s, axis=-1, keepdims=True)
        p = jnp.exp(s)
        p = p * pl.reciprocal(jnp.sum(p, axis=-1, keepdims=True), approx=True)
        outs.append(jnp.dot(p.astype(v.dtype), v,
                            preferred_element_type=jnp.float32))   # (L, dh)
    # single lane-dense full-width store
    # TODO(synk): for large L / many heads, store each head as it is produced
    # (bounded live ranges) and add a q-tile / head grid axis for v7x's 2 TCs.
    o_ref[0] = jnp.concatenate(outs, axis=-1).astype(o_ref.dtype)


def attention(q_arr, q_blk, kv_arr, k_blk, v_blk, L, S, E, nhead):
    """q_arr: (N, L, q_blk*E..), kv_arr: (N, S, ..) packed along the lane dim.

    The E-wide q/k/v views are selected by lane-block indices (q_blk/k_blk/
    v_blk) in the BlockSpec index maps, so no slice copies hit HBM.
    Returns (N, L, E) bf16 (consumed only as a matmul operand downstream).
    """
    # TODO(synk): for long S, add an S grid axis ("arbitrary") with an online
    # softmax accumulator; demo S is small so (L, S) scores fit in VMEM.
    N = q_arr.shape[0]
    dh = E // nhead
    scale = 1.0 / float(dh) ** 0.5
    kern = functools.partial(_mha_kernel, nhead=nhead, scale=scale)
    return pl.pallas_call(
        kern,
        out_shape=jax.ShapeDtypeStruct((N, L, E), jnp.bfloat16),
        grid=(N,),
        in_specs=[
            pl.BlockSpec((1, L, E), lambda b, _c=q_blk: (b, 0, _c)),
            pl.BlockSpec((1, S, E), lambda b, _c=k_blk: (b, 0, _c)),
            pl.BlockSpec((1, S, E), lambda b, _c=v_blk: (b, 0, _c)),
        ],
        out_specs=pl.BlockSpec((1, L, E), lambda b: (b, 0, 0)),
        compiler_params=pltpu.CompilerParams(dimension_semantics=("parallel",)),
    )(q_arr, kv_arr, kv_arr)


# ----------------------------------------------------------------------------
# Decoder built from the kernels (glue in plain JAX)
# ----------------------------------------------------------------------------

def decoder_layer(x, mem, p, nhead):
    """One nn.TransformerDecoderLayer (post-norm, ReLU, dropout=0 / eval).

    x: (N, L, E), mem: (N, S, E) -> (N, L, E), residual stream kept in f32.
    """
    N, L, E = x.shape
    S = mem.shape[1]
    x2 = x.reshape(N * L, E)                                   # f32

    # ----- self-attention block (fused QKV projection: ONE matmul) -----
    sp = p["self_attn"]
    qkv = linear(x2, sp["in_proj_w"], sp["in_proj_b"],
                 out_dtype=jnp.bfloat16).reshape(N, L, 3 * E)
    sa = attention(qkv, 0, qkv, 1, 2, L, L, E, nhead).reshape(N * L, E)
    x2 = linear_res_ln(sa, sp["out_proj_w"], sp["out_proj_b"],
                       x2, p["norm1_w"], p["norm1_b"])

    # ----- cross-attention block (fused KV projection from memory) -----
    cp_ = p["cross_attn"]
    wq, bq = cp_["in_proj_w"][:, :E], cp_["in_proj_b"][:E]
    wkv, bkv = cp_["in_proj_w"][:, E:], cp_["in_proj_b"][E:]
    q = linear(x2, wq, bq, out_dtype=jnp.bfloat16).reshape(N, L, E)
    kv = linear(mem.reshape(N * S, E), wkv, bkv,
                out_dtype=jnp.bfloat16).reshape(N, S, 2 * E)
    ca = attention(q, 0, kv, 0, 1, L, S, E, nhead).reshape(N * L, E)
    x2 = linear_res_ln(ca, cp_["out_proj_w"], cp_["out_proj_b"],
                       x2, p["norm2_w"], p["norm2_b"])

    # ----- feed-forward block -----
    h = linear(x2, p["linear1_w"], p["linear1_b"], relu=True,
               out_dtype=jnp.bfloat16)
    x2 = linear_res_ln(h, p["linear2_w"], p["linear2_b"],
                       x2, p["norm3_w"], p["norm3_b"])

    return x2.reshape(N, L, E)


def transformer_decoder(tgt, memory, params, nhead,
                        tgt_mask=None, memory_mask=None,
                        tgt_key_padding_mask=None, memory_key_padding_mask=None):
    """tgt: (L, N, E), memory: (S, N, E) -> (L, N, E)."""
    # TODO(synk): attention masks / key-padding masks are not applied in the
    # Pallas attention kernel (demo calls with None, matching the default path).
    assert tgt_mask is None and memory_mask is None
    assert tgt_key_padding_mask is None and memory_key_padding_mask is None

    x = jnp.transpose(tgt, (1, 0, 2))        # (N, L, E)
    mem = jnp.transpose(memory, (1, 0, 2))   # (N, S, E)
    for layer_p in params["layers"]:
        x = decoder_layer(x, mem, layer_p, nhead)
    if params["final_norm"] is not None:
        N, L, E = x.shape
        fn = params["final_norm"]
        x = layernorm(x.reshape(N * L, E), fn["w"], fn["b"]).reshape(N, L, E)
    return jnp.transpose(x, (1, 0, 2))


# ----------------------------------------------------------------------------
# Deterministic parameter init (weights stored in (in, out) layout so no
# per-call transposes are needed; semantics match nn.TransformerDecoderLayer)
# ----------------------------------------------------------------------------

def init_params(key, num_layers, d_model, dim_ff):
    def mha_params(k):
        k1, k2, k3, k4 = jax.random.split(k, 4)
        return {
            "in_proj_w": 0.05 * jax.random.normal(k1, (d_model, 3 * d_model), jnp.float32),
            "in_proj_b": 0.01 * jax.random.normal(k2, (3 * d_model,), jnp.float32),
            "out_proj_w": 0.05 * jax.random.normal(k3, (d_model, d_model), jnp.float32),
            "out_proj_b": 0.01 * jax.random.normal(k4, (d_model,), jnp.float32),
        }

    layers = []
    keys = jax.random.split(key, num_layers)
    for lk in keys:
        k1, k2, k3, k4, k5, k6 = jax.random.split(lk, 6)
        layers.append({
            "self_attn": mha_params(k1),
            "cross_attn": mha_params(k2),
            "linear1_w": 0.05 * jax.random.normal(k3, (d_model, dim_ff), jnp.float32),
            "linear1_b": 0.01 * jax.random.normal(k4, (dim_ff,), jnp.float32),
            "linear2_w": 0.05 * jax.random.normal(k5, (dim_ff, d_model), jnp.float32),
            "linear2_b": 0.01 * jax.random.normal(k6, (d_model,), jnp.float32),
            "norm1_w": jnp.ones((d_model,), jnp.float32),
            "norm1_b": jnp.zeros((d_model,), jnp.float32),
            "norm2_w": jnp.ones((d_model,), jnp.float32),
            "norm2_b": jnp.zeros((d_model,), jnp.float32),
            "norm3_w": jnp.ones((d_model,), jnp.float32),
            "norm3_b": jnp.zeros((d_model,), jnp.float32),
        })
    final_norm = {"w": jnp.ones((d_model,), jnp.float32),
                  "b": jnp.zeros((d_model,), jnp.float32)}
    return {"layers": layers, "final_norm": final_norm}


# ----------------------------------------------------------------------------
# Pure-JAX f32 reference (same math, no Pallas) for a sanity check
# ----------------------------------------------------------------------------

def _ref_mha(x_q, x_kv, p, nhead):
    N, L, E = x_q.shape
    S = x_kv.shape[1]
    dh = E // nhead
    w, b = p["in_proj_w"], p["in_proj_b"]
    hp = jax.lax.Precision.HIGHEST
    q = (x_q @ w[:, :E] + b[:E]).reshape(N, L, nhead, dh).transpose(0, 2, 1, 3)
    k = (x_kv @ w[:, E:2 * E] + b[E:2 * E]).reshape(N, S, nhead, dh).transpose(0, 2, 1, 3)
    v = (x_kv @ w[:, 2 * E:] + b[2 * E:]).reshape(N, S, nhead, dh).transpose(0, 2, 1, 3)
    s = jnp.einsum("nhld,nhsd->nhls", q, k, precision=hp) / jnp.sqrt(float(dh))
    pr = jax.nn.softmax(s, axis=-1)
    o = jnp.einsum("nhls,nhsd->nhld", pr, v, precision=hp)
    o = o.transpose(0, 2, 1, 3).reshape(N, L, E)
    return o @ p["out_proj_w"] + p["out_proj_b"]


def _ref_ln(x, w, b, eps=1e-5):
    m = jnp.mean(x, axis=-1, keepdims=True)
    v = jnp.mean((x - m) ** 2, axis=-1, keepdims=True)
    return (x - m) * jax.lax.rsqrt(v + eps) * w + b


def reference_decoder(tgt, memory, params, nhead):
    x = jnp.transpose(tgt, (1, 0, 2))
    mem = jnp.transpose(memory, (1, 0, 2))
    for p in params["layers"]:
        x = _ref_ln(x + _ref_mha(x, x, p["self_attn"], nhead), p["norm1_w"], p["norm1_b"])
        x = _ref_ln(x + _ref_mha(x, mem, p["cross_attn"], nhead), p["norm2_w"], p["norm2_b"])
        h = jnp.maximum(x @ p["linear1_w"] + p["linear1_b"], 0.0)
        h = h @ p["linear2_w"] + p["linear2_b"]
        x = _ref_ln(x + h, p["norm3_w"], p["norm3_b"])
    fn = params["final_norm"]
    x = _ref_ln(x, fn["w"], fn["b"])
    return jnp.transpose(x, (1, 0, 2))


# ----------------------------------------------------------------------------

if __name__ == "__main__":
    # Small but lane-dense shapes: last dims presented to Pallas are 128/256/384.
    L, S, N, E = 8, 16, 2, 128          # tgt len, memory len, batch, d_model
    NHEAD, DIM_FF, NUM_LAYERS = 4, 256, 2

    root = jax.random.PRNGKey(0)
    k_tgt, k_mem, k_par = jax.random.split(root, 3)
    tgt = jax.random.normal(k_tgt, (L, N, E), jnp.float32)
    memory = jax.random.normal(k_mem, (S, N, E), jnp.float32)
    params = init_params(k_par, NUM_LAYERS, E, DIM_FF)

    fwd = jax.jit(functools.partial(transformer_decoder, nhead=NHEAD))
    out = jax.block_until_ready(fwd(tgt, memory, params))
    assert out.shape == (L, N, E) and out.dtype == jnp.float32

    ref = jax.block_until_ready(reference_decoder(tgt, memory, params, NHEAD))
    # Tolerance accounts for bf16 MXU operands (f32 accumulate) and the
    # approximate EUP reciprocal in softmax vs. the pure-f32 reference.
    err = jnp.max(jnp.abs(out - ref))
    assert err < 1e-1, f"Pallas output mismatch vs JAX reference: {err}"

    print("KERNEL_OK")
</pallas_src>

<mosaic_0001>
module attributes {stable_mosaic.version = 11 : i64} {
  func.func @_mha_kernel(%arg0: i32, %arg1: memref<1x8x128xbf16, #tpu.memory_space<vmem>>, %arg2: memref<1x8x128xbf16, #tpu.memory_space<vmem>>, %arg3: memref<1x8x128xbf16, #tpu.memory_space<vmem>>, %arg4: memref<1x8x128xbf16, #tpu.memory_space<vmem>>) attributes {dimension_semantics = [#tpu.dimension_semantics<parallel>], iteration_bounds = array<i64: 2>, scalar_prefetch = 0 : i64, scratch_operands = 0 : i64, tpu.core_type = #tpu.core_type<tc>, window_params = [{transform_indices = @transform_0, window_bounds = array<i64: 1, 8, 128>}, {transform_indices = @transform_1, window_bounds = array<i64: 1, 8, 128>}, {transform_indices = @transform_2, window_bounds = array<i64: 1, 8, 128>}, {transform_indices = @transform_3, window_bounds = array<i64: 1, 8, 128>}]} {
    %c0 = arith.constant 0 : index
    %c0_0 = arith.constant 0 : index
    %c0_1 = arith.constant 0 : index
    %0 = vector.load %arg1[%c0, %c0_0, %c0_1] : memref<1x8x128xbf16, #tpu.memory_space<vmem>>, vector<1x8x32xbf16>
    %1 = vector.shape_cast %0 : vector<1x8x32xbf16> to vector<8x32xbf16>
    %c0_2 = arith.constant 0 : index
    %c0_3 = arith.constant 0 : index
    %c0_4 = arith.constant 0 : index
    %2 = vector.load %arg2[%c0_2, %c0_3, %c0_4] : memref<1x8x128xbf16, #tpu.memory_space<vmem>>, vector<1x8x32xbf16>
    %3 = vector.shape_cast %2 : vector<1x8x32xbf16> to vector<8x32xbf16>
    %c0_5 = arith.constant 0 : index
    %c0_6 = arith.constant 0 : index
    %c0_7 = arith.constant 0 : index
    %4 = vector.load %arg3[%c0_5, %c0_6, %c0_7] : memref<1x8x128xbf16, #tpu.memory_space<vmem>>, vector<1x8x32xbf16>
    %5 = vector.shape_cast %4 : vector<1x8x32xbf16> to vector<8x32xbf16>
    %cst = arith.constant dense<0.000000e+00> : vector<8x8xf32>
    %6 = tpu.matmul %1, %3, %cst {dimension_numbers = #tpu.dot_dimension_numbers<[1], [1], [0], [0], [0, 0, 1, 0], [], []>} : vector<8x32xbf16>, vector<8x32xbf16>, vector<8x8xf32> -> vector<8x8xf32>
    %cst_8 = arith.constant 0.176776692 : f32
    %7 = vector.broadcast %cst_8 : f32 to vector<8x8xf32>
    %8 = arith.mulf %6, %7 : vector<8x8xf32>
    %cst_9 = arith.constant dense<0xFF800000> : vector<8xf32>
    %9 = vector.multi_reduction <maximumf>, %8, %cst_9 [1] : vector<8x8xf32> to vector<8xf32>
    %10 = vector.shape_cast %9 : vector<8xf32> to vector<8x1xf32>
    %11 = vector.broadcast %10 : vector<8x1xf32> to vector<8x8xf32>
    %12 = arith.subf %8, %11 : vector<8x8xf32>
    %13 = math.exp %12 : vector<8x8xf32>
    %cst_10 = arith.constant dense<0.000000e+00> : vector<8xf32>
    %14 = vector.multi_reduction <add>, %13, %cst_10 [1] : vector<8x8xf32> to vector<8xf32>
    %15 = vector.shape_cast %14 : vector<8xf32> to vector<8x1xf32>
    %16 = tpu.reciprocal %15 {approx = true} : vector<8x1xf32> -> vector<8x1xf32>
    %17 = vector.broadcast %16 : vector<8x1xf32> to vector<8x8xf32>
    %18 = arith.mulf %13, %17 : vector<8x8xf32>
    %19 = arith.truncf %18 : vector<8x8xf32> to vector<8x8xbf16>
    %cst_11 = arith.constant dense<0.000000e+00> : vector<8x32xf32>
    %20 = tpu.matmul %19, %5, %cst_11 {dimension_numbers = #tpu.dot_dimension_numbers<[1], [0], [0], [1], [0, 0, 1, 1], [], []>} : vector<8x8xbf16>, vector<8x32xbf16>, vector<8x32xf32> -> vector<8x32xf32>
    %c0_12 = arith.constant 0 : index
    %c0_13 = arith.constant 0 : index
    %c32 = arith.constant 32 : index
    %21 = vector.load %arg1[%c0_12, %c0_13, %c32] : memref<1x8x128xbf16, #tpu.memory_space<vmem>>, vector<1x8x32xbf16>
    %22 = vector.shape_cast %21 : vector<1x8x32xbf16> to vector<8x32xbf16>
    %c0_14 = arith.constant 0 : index
    %c0_15 = arith.constant 0 : index
    %c32_16 = arith.constant 32 : index
    %23 = vector.load %arg2[%c0_14, %c0_15, %c32_16] : memref<1x8x128xbf16, #tpu.memory_space<vmem>>, vector<1x8x32xbf16>
    %24 = vector.shape_cast %23 : vector<1x8x32xbf16> to vector<8x32xbf16>
    %c0_17 = arith.constant 0 : index
    %c0_18 = arith.constant 0 : index
    %c32_19 = arith.constant 32 : index
    %25 = vector.load %arg3[%c0_17, %c0_18, %c32_19] : memref<1x8x128xbf16, #tpu.memory_space<vmem>>, vector<1x8x32xbf16>
    %26 = vector.shape_cast %25 : vector<1x8x32xbf16> to vector<8x32xbf16>
    %cst_20 = arith.constant dense<0.000000e+00> : vector<8x8xf32>
    %27 = tpu.matmul %22, %24, %cst_20 {dimension_numbers = #tpu.dot_dimension_numbers<[1], [1], [0], [0], [0, 0, 1, 0], [], []>} : vector<8x32xbf16>, vector<8x32xbf16>, vector<8x8xf32> -> vector<8x8xf32>
    %cst_21 = arith.constant 0.176776692 : f32
    %28 = vector.broadcast %cst_21 : f32 to vector<8x8xf32>
    %29 = arith.mulf %27, %28 : vector<8x8xf32>
    %cst_22 = arith.constant dense<0xFF800000> : vector<8xf32>
    %30 = vector.multi_reduction <maximumf>, %29, %cst_22 [1] : vector<8x8xf32> to vector<8xf32>
    %31 = vector.shape_cast %30 : vector<8xf32> to vector<8x1xf32>
    %32 = vector.broadcast %31 : vector<8x1xf32> to vector<8x8xf32>
    %33 = arith.subf %29, %32 : vector<8x8xf32>
    %34 = math.exp %33 : vector<8x8xf32>
    %cst_23 = arith.constant dense<0.000000e+00> : vector<8xf32>
    %35 = vector.multi_reduction <add>, %34, %cst_23 [1] : vector<8x8xf32> to vector<8xf32>
    %36 = vector.shape_cast %35 : vector<8xf32> to vector<8x1xf32>
    %37 = tpu.reciprocal %36 {approx = true} : vector<8x1xf32> -> vector<8x1xf32>
    %38 = vector.broadcast %37 : vector<8x1xf32> to vector<8x8xf32>
    %39 = arith.mulf %34, %38 : vector<8x8xf32>
    %40 = arith.truncf %39 : vector<8x8xf32> to vector<8x8xbf16>
    %cst_24 = arith.constant dense<0.000000e+00> : vector<8x32xf32>
    %41 = tpu.matmul %40, %26, %cst_24 {dimension_numbers = #tpu.dot_dimension_numbers<[1], [0], [0], [1], [0, 0, 1, 1], [], []>} : vector<8x8xbf16>, vector<8x32xbf16>, vector<8x32xf32> -> vector<8x32xf32>
    %c0_25 = arith.constant 0 : index
    %c0_26 = arith.constant 0 : index
    %c64 = arith.constant 64 : index
    %42 = vector.load %arg1[%c0_25, %c0_26, %c64] : memref<1x8x128xbf16, #tpu.memory_space<vmem>>, vector<1x8x32xbf16>
    %43 = vector.shape_cast %42 : vector<1x8x32xbf16> to vector<8x32xbf16>
    %c0_27 = arith.constant 0 : index
    %c0_28 = arith.constant 0 : index
    %c64_29 = arith.constant 64 : index
    %44 = vector.load %arg2[%c0_27, %c0_28, %c64_29] : memref<1x8x128xbf16, #tpu.memory_space<vmem>>, vector<1x8x32xbf16>
    %45 = vector.shape_cast %44 : vector<1x8x32xbf16> to vector<8x32xbf16>
    %c0_30 = arith.constant 0 : index
    %c0_31 = arith.constant 0 : index
    %c64_32 = arith.constant 64 : index
    %46 = vector.load %arg3[%c0_30, %c0_31, %c64_32] : memref<1x8x128xbf16, #tpu.memory_space<vmem>>, vector<1x8x32xbf16>
    %47 = vector.shape_cast %46 : vector<1x8x32xbf16> to vector<8x32xbf16>
    %cst_33 = arith.constant dense<0.000000e+00> : vector<8x8xf32>
    %48 = tpu.matmul %43, %45, %cst_33 {dimension_numbers = #tpu.dot_dimension_numbers<[1], [1], [0], [0], [0, 0, 1, 0], [], []>} : vector<8x32xbf16>, vector<8x32xbf16>, vector<8x8xf32> -> vector<8x8xf32>
    %cst_34 = arith.constant 0.176776692 : f32
    %49 = vector.broadcast %cst_34 : f32 to vector<8x8xf32>
    %50 = arith.mulf %48, %49 : vector<8x8xf32>
    %cst_35 = arith.constant dense<0xFF800000> : vector<8xf32>
    %51 = vector.multi_reduction <maximumf>, %50, %cst_35 [1] : vector<8x8xf32> to vector<8xf32>
    %52 = vector.shape_cast %51 : vector<8xf32> to vector<8x1xf32>
    %53 = vector.broadcast %52 : vector<8x1xf32> to vector<8x8xf32>
    %54 = arith.subf %50, %53 : vector<8x8xf32>
    %55 = math.exp %54 : vector<8x8xf32>
    %cst_36 = arith.constant dense<0.000000e+00> : vector<8xf32>
    %56 = vector.multi_reduction <add>, %55, %cst_36 [1] : vector<8x8xf32> to vector<8xf32>
    %57 = vector.shape_cast %56 : vector<8xf32> to vector<8x1xf32>
    %58 = tpu.reciprocal %57 {approx = true} : vector<8x1xf32> -> vector<8x1xf32>
    %59 = vector.broadcast %58 : vector<8x1xf32> to vector<8x8xf32>
    %60 = arith.mulf %55, %59 : vector<8x8xf32>
    %61 = arith.truncf %60 : vector<8x8xf32> to vector<8x8xbf16>
    %cst_37 = arith.constant dense<0.000000e+00> : vector<8x32xf32>
    %62 = tpu.matmul %61, %47, %cst_37 {dimension_numbers = #tpu.dot_dimension_numbers<[1], [0], [0], [1], [0, 0, 1, 1], [], []>} : vector<8x8xbf16>, vector<8x32xbf16>, vector<8x32xf32> -> vector<8x32xf32>
    %c0_38 = arith.constant 0 : index
    %c0_39 = arith.constant 0 : index
    %c96 = arith.constant 96 : index
    %63 = vector.load %arg1[%c0_38, %c0_39, %c96] : memref<1x8x128xbf16, #tpu.memory_space<vmem>>, vector<1x8x32xbf16>
    %64 = vector.shape_cast %63 : vector<1x8x32xbf16> to vector<8x32xbf16>
    %c0_40 = arith.constant 0 : index
    %c0_41 = arith.constant 0 : index
    %c96_42 = arith.constant 96 : index
    %65 = vector.load %arg2[%c0_40, %c0_41, %c96_42] : memref<1x8x128xbf16, #tpu.memory_space<vmem>>, vector<1x8x32xbf16>
    %66 = vector.shape_cast %65 : vector<1x8x32xbf16> to vector<8x32xbf16>
    %c0_43 = arith.constant 0 : index
    %c0_44 = arith.constant 0 : index
    %c96_45 = arith.constant 96 : index
    %67 = vector.load %arg3[%c0_43, %c0_44, %c96_45] : memref<1x8x128xbf16, #tpu.memory_space<vmem>>, vector<1x8x32xbf16>
    %68 = vector.shape_cast %67 : vector<1x8x32xbf16> to vector<8x32xbf16>
    %cst_46 = arith.constant dense<0.000000e+00> : vector<8x8xf32>
    %69 = tpu.matmul %64, %66, %cst_46 {dimension_numbers = #tpu.dot_dimension_numbers<[1], [1], [0], [0], [0, 0, 1, 0], [], []>} : vector<8x32xbf16>, vector<8x32xbf16>, vector<8x8xf32> -> vector<8x8xf32>
    %cst_47 = arith.constant 0.176776692 : f32
    %70 = vector.broadcast %cst_47 : f32 to vector<8x8xf32>
    %71 = arith.mulf %69, %70 : vector<8x8xf32>
    %cst_48 = arith.constant dense<0xFF800000> : vector<8xf32>
    %72 = vector.multi_reduction <maximumf>, %71, %cst_48 [1] : vector<8x8xf32> to vector<8xf32>
    %73 = vector.shape_cast %72 : vector<8xf32> to vector<8x1xf32>
    %74 = vector.broadcast %73 : vector<8x1xf32> to vector<8x8xf32>
    %75 = arith.subf %71, %74 : vector<8x8xf32>
    %76 = math.exp %75 : vector<8x8xf32>
    %cst_49 = arith.constant dense<0.000000e+00> : vector<8xf32>
    %77 = vector.multi_reduction <add>, %76, %cst_49 [1] : vector<8x8xf32> to vector<8xf32>
    %78 = vector.shape_cast %77 : vector<8xf32> to vector<8x1xf32>
    %79 = tpu.reciprocal %78 {approx = true} : vector<8x1xf32> -> vector<8x1xf32>
    %80 = vector.broadcast %79 : vector<8x1xf32> to vector<8x8xf32>
    %81 = arith.mulf %76, %80 : vector<8x8xf32>
    %82 = arith.truncf %81 : vector<8x8xf32> to vector<8x8xbf16>
    %cst_50 = arith.constant dense<0.000000e+00> : vector<8x32xf32>
    %83 = tpu.matmul %82, %68, %cst_50 {dimension_numbers = #tpu.dot_dimension_numbers<[1], [0], [0], [1], [0, 0, 1, 1], [], []>} : vector<8x8xbf16>, vector<8x32xbf16>, vector<8x32xf32> -> vector<8x32xf32>
    %84 = tpu.concatenate %20, %41, %62, %83 in 1 : vector<8x32xf32>, vector<8x32xf32>, vector<8x32xf32>, vector<8x32xf32> -> vector<8x128xf32>
    %85 = arith.truncf %84 : vector<8x128xf32> to vector<8x128xbf16>
    %c0_51 = arith.constant 0 : index
    %c0_52 = arith.constant 0 : index
    %c0_53 = arith.constant 0 : index
    %86 = vector.load %arg4[%c0_51, %c0_52, %c0_53] : memref<1x8x128xbf16, #tpu.memory_space<vmem>>, vector<1x8x128xbf16>
    %87 = vector.shape_cast %86 : vector<1x8x128xbf16> to vector<8x128xbf16>
    %88 = vector.shape_cast %85 : vector<8x128xbf16> to vector<1x8x128xbf16>
    tpu.vector_store %arg4[%c0_51, %c0_52, %c0_53], %88 {strides = array<i32>} : memref<1x8x128xbf16, #tpu.memory_space<vmem>>, vector<1x8x128xbf16>,
    return
  }
  func.func @transform_0(%arg0: i32) -> (i32, i32, i32) {
    %c0_i32 = arith.constant 0 : i32
    %c0_i32_0 = arith.constant 0 : i32
    %c0_i32_1 = arith.constant 0 : i32
    return %arg0, %c0_i32, %c0_i32_0 : i32, i32, i32
  }
  func.func @transform_1(%arg0: i32) -> (i32, i32, i32) {
    %c0_i32 = arith.constant 0 : i32
    %c1_i32 = arith.constant 1 : i32
    %c0_i32_0 = arith.constant 0 : i32
    return %arg0, %c0_i32, %c1_i32 : i32, i32, i32
  }
  func.func @transform_2(%arg0: i32) -> (i32, i32, i32) {
    %c0_i32 = arith.constant 0 : i32
    %c2_i32 = arith.constant 2 : i32
    %c0_i32_0 = arith.constant 0 : i32
    return %arg0, %c0_i32, %c2_i32 : i32, i32, i32
  }
  func.func @transform_3(%arg0: i32) -> (i32, i32, i32) {
    %c0_i32 = arith.constant 0 : i32
    %c0_i32_0 = arith.constant 0 : i32
    %c0_i32_1 = arith.constant 0 : i32
    return %arg0, %c0_i32, %c0_i32_0 : i32, i32, i32
  }
}

module attributes {stable_mosaic.version = 11 : i64} {
  func.func @_linear_kernel(%arg0: i32, %arg1: i32, %arg2: i32, %arg3: memref<16x128xbf16, #tpu.memory_space<vmem>>, %arg4: memref<128x128xbf16, #tpu.memory_space<vmem>>, %arg5: memref<1x128xf32, #tpu.memory_space<vmem>>, %arg6: memref<16x128xbf16, #tpu.memory_space<vmem>>, %arg7: memref<16x128xf32, #tpu.memory_space<vmem>>) attributes {dimension_semantics = [#tpu.dimension_semantics<parallel>, #tpu.dimension_semantics<parallel>, #tpu.dimension_semantics<arbitrary>], iteration_bounds = array<i64: 1, 3, 1>, scalar_prefetch = 0 : i64, scratch_operands = 1 : i64, tpu.core_type = #tpu.core_type<tc>, window_params = [{transform_indices = @transform_0, window_bounds = array<i64: 16, 128>}, {transform_indices = @transform_1, window_bounds = array<i64: 128, 128>}, {transform_indices = @transform_2, window_bounds = array<i64: 1, 128>}, {transform_indices = @transform_3, window_bounds = array<i64: 16, 128>}]} {
    %c0_i32 = arith.constant 0 : i32
    %0 = arith.cmpi eq, %arg2, %c0_i32 : i32
    %1 = arith.extui %0 : i1 to i32
    %c0_i32_0 = arith.constant 0 : i32
    %2 = arith.cmpi ne, %1, %c0_i32_0 : i32
    scf.if %2 {
      %cst_10 = arith.constant 0.000000e+00 : f32
      %12 = vector.broadcast %cst_10 : f32 to vector<16x128xf32>
      %c0_11 = arith.constant 0 : index
      %c0_12 = arith.constant 0 : index
      %13 = vector.load %arg7[%c0_11, %c0_12] : memref<16x128xf32, #tpu.memory_space<vmem>>, vector<16x128xf32>
      tpu.vector_store %arg7[%c0_11, %c0_12], %12 {strides = array<i32>} : memref<16x128xf32, #tpu.memory_space<vmem>>, vector<16x128xf32>,
    } else {
    }
    %c0 = arith.constant 0 : index
    %c0_1 = arith.constant 0 : index
    %3 = vector.load %arg7[%c0, %c0_1] : memref<16x128xf32, #tpu.memory_space<vmem>>, vector<16x128xf32>
    %c0_2 = arith.constant 0 : index
    %c0_3 = arith.constant 0 : index
    %4 = vector.load %arg3[%c0_2, %c0_3] : memref<16x128xbf16, #tpu.memory_space<vmem>>, vector<16x128xbf16>
    %c0_4 = arith.constant 0 : index
    %c0_5 = arith.constant 0 : index
    %5 = vector.load %arg4[%c0_4, %c0_5] : memref<128x128xbf16, #tpu.memory_space<vmem>>, vector<128x128xbf16>
    %cst = arith.constant dense<0.000000e+00> : vector<16x128xf32>
    %6 = tpu.matmul %4, %5, %cst {dimension_numbers = #tpu.dot_dimension_numbers<[1], [0], [0], [1], [0, 0, 1, 1], [], []>} : vector<16x128xbf16>, vector<128x128xbf16>, vector<16x128xf32> -> vector<16x128xf32>
    %7 = arith.addf %3, %6 : vector<16x128xf32>
    %c0_6 = arith.constant 0 : index
    %c0_7 = arith.constant 0 : index
    %8 = vector.load %arg7[%c0_6, %c0_7] : memref<16x128xf32, #tpu.memory_space<vmem>>, vector<16x128xf32>
    tpu.vector_store %arg7[%c0_6, %c0_7], %7 {strides = array<i32>} : memref<16x128xf32, #tpu.memory_space<vmem>>, vector<16x128xf32>,
    %c0_i32_8 = arith.constant 0 : i32
    %9 = arith.cmpi eq, %arg2, %c0_i32_8 : i32
    %10 = arith.extui %9 : i1 to i32
    %c0_i32_9 = arith.constant 0 : i32
    %11 = arith.cmpi ne, %10, %c0_i32_9 : i32
    scf.if %11 {
      %c0_10 = arith.constant 0 : index
      %c0_11 = arith.constant 0 : index
      %12 = vector.load %arg7[%c0_10, %c0_11] : memref<16x128xf32, #tpu.memory_space<vmem>>, vector<16x128xf32>
      %c0_12 = arith.constant 0 : index
      %c0_13 = arith.constant 0 : index
      %13 = vector.load %arg5[%c0_12, %c0_13] : memref<1x128xf32, #tpu.memory_space<vmem>>, vector<1x128xf32>
      %14 = vector.broadcast %13 : vector<1x128xf32> to vector<16x128xf32>
      %15 = arith.addf %12, %14 : vector<16x128xf32>
      %16 = arith.truncf %15 : vector<16x128xf32> to vector<16x128xbf16>
      %c0_14 = arith.constant 0 : index
      %c0_15 = arith.constant 0 : index
      %17 = vector.load %arg6[%c0_14, %c0_15] : memref<16x128xbf16, #tpu.memory_space<vmem>>, vector<16x128xbf16>
      tpu.vector_store %arg6[%c0_14, %c0_15], %16 {strides = array<i32>} : memref<16x128xbf16, #tpu.memory_space<vmem>>, vector<16x128xbf16>,
    } else {
    }
    return
  }
  func.func @transform_0(%arg0: i32, %arg1: i32, %arg2: i32) -> (i32, i32) {
    %c0_i32 = arith.constant 0 : i32
    return %arg0, %arg2 : i32, i32
  }
  func.func @transform_1(%arg0: i32, %arg1: i32, %arg2: i32) -> (i32, i32) {
    %c0_i32 = arith.constant 0 : i32
    return %arg2, %arg1 : i32, i32
  }
  func.func @transform_2(%arg0: i32, %arg1: i32, %arg2: i32) -> (i32, i32) {
    %c0_i32 = arith.constant 0 : i32
    %c0_i32_0 = arith.constant 0 : i32
    return %c0_i32, %arg1 : i32, i32
  }
  func.func @transform_3(%arg0: i32, %arg1: i32, %arg2: i32) -> (i32, i32) {
    %c0_i32 = arith.constant 0 : i32
    return %arg0, %arg1 : i32, i32
  }
}

module attributes {stable_mosaic.version = 11 : i64} {
  func.func @_linear_res_ln_kernel(%arg0: i32, %arg1: i32, %arg2: memref<16x128xbf16, #tpu.memory_space<vmem>>, %arg3: memref<128x128xbf16, #tpu.memory_space<vmem>>, %arg4: memref<1x128xf32, #tpu.memory_space<vmem>>, %arg5: memref<16x128xf32, #tpu.memory_space<vmem>>, %arg6: memref<1x128xf32, #tpu.memory_space<vmem>>, %arg7: memref<1x128xf32, #tpu.memory_space<vmem>>, %arg8: memref<16x128xf32, #tpu.memory_space<vmem>>) attributes {dimension_semantics = [#tpu.dimension_semantics<parallel>, #tpu.dimension_semantics<arbitrary>], iteration_bounds = array<i64: 1, 1>, scalar_prefetch = 0 : i64, scratch_operands = 0 : i64, tpu.core_type = #tpu.core_type<tc>, window_params = [{transform_indices = @transform_0, window_bounds = array<i64: 16, 128>}, {transform_indices = @transform_1, window_bounds = array<i64: 128, 128>}, {pipeline_mode = #tpu.pipeline_mode<synchronous>, transform_indices = @transform_2, window_bounds = array<i64: 1, 128>}, {transform_indices = @transform_3, window_bounds = array<i64: 16, 128>}, {pipeline_mode = #tpu.pipeline_mode<synchronous>, transform_indices = @transform_4, window_bounds = array<i64: 1, 128>}, {pipeline_mode = #tpu.pipeline_mode<synchronous>, transform_indices = @transform_5, window_bounds = array<i64: 1, 128>}, {transform_indices = @transform_6, window_bounds = array<i64: 16, 128>}]} {
    %c0_i32 = arith.constant 0 : i32
    %0 = arith.cmpi eq, %arg1, %c0_i32 : i32
    %1 = arith.extui %0 : i1 to i32
    %c0_i32_0 = arith.constant 0 : i32
    %2 = arith.cmpi ne, %1, %c0_i32_0 : i32
    scf.if %2 {
      %cst_10 = arith.constant 0.000000e+00 : f32
      %12 = vector.broadcast %cst_10 : f32 to vector<16x128xf32>
      %c0_11 = arith.constant 0 : index
      %c0_12 = arith.constant 0 : index
      %13 = vector.load %arg8[%c0_11, %c0_12] : memref<16x128xf32, #tpu.memory_space<vmem>>, vector<16x128xf32>
      tpu.vector_store %arg8[%c0_11, %c0_12], %12 {strides = array<i32>} : memref<16x128xf32, #tpu.memory_space<vmem>>, vector<16x128xf32>,
    } else {
    }
    %c0 = arith.constant 0 : index
    %c0_1 = arith.constant 0 : index
    %3 = vector.load %arg8[%c0, %c0_1] : memref<16x128xf32, #tpu.memory_space<vmem>>, vector<16x128xf32>
    %c0_2 = arith.constant 0 : index
    %c0_3 = arith.constant 0 : index
    %4 = vector.load %arg2[%c0_2, %c0_3] : memref<16x128xbf16, #tpu.memory_space<vmem>>, vector<16x128xbf16>
    %c0_4 = arith.constant 0 : index
    %c0_5 = arith.constant 0 : index
    %5 = vector.load %arg3[%c0_4, %c0_5] : memref<128x128xbf16, #tpu.memory_space<vmem>>, vector<128x128xbf16>
    %cst = arith.constant dense<0.000000e+00> : vector<16x128xf32>
    %6 = tpu.matmul %4, %5, %cst {dimension_numbers = #tpu.dot_dimension_numbers<[1], [0], [0], [1], [0, 0, 1, 1], [], []>} : vector<16x128xbf16>, vector<128x128xbf16>, vector<16x128xf32> -> vector<16x128xf32>
    %7 = arith.addf %3, %6 : vector<16x128xf32>
    %c0_6 = arith.constant 0 : index
    %c0_7 = arith.constant 0 : index
    %8 = vector.load %arg8[%c0_6, %c0_7] : memref<16x128xf32, #tpu.memory_space<vmem>>, vector<16x128xf32>
    tpu.vector_store %arg8[%c0_6, %c0_7], %7 {strides = array<i32>} : memref<16x128xf32, #tpu.memory_space<vmem>>, vector<16x128xf32>,
    %c0_i32_8 = arith.constant 0 : i32
    %9 = arith.cmpi eq, %arg1, %c0_i32_8 : i32
    %10 = arith.extui %9 : i1 to i32
    %c0_i32_9 = arith.constant 0 : i32
    %11 = arith.cmpi ne, %10, %c0_i32_9 : i32
    scf.if %11 {
      %c0_10 = arith.constant 0 : index
      %c0_11 = arith.constant 0 : index
      %12 = vector.load %arg8[%c0_10, %c0_11] : memref<16x128xf32, #tpu.memory_space<vmem>>, vector<16x128xf32>
      %c0_12 = arith.constant 0 : index
      %c0_13 = arith.constant 0 : index
      %13 = vector.load %arg4[%c0_12, %c0_13] : memref<1x128xf32, #tpu.memory_space<vmem>>, vector<1x128xf32>
      %14 = vector.broadcast %13 : vector<1x128xf32> to vector<16x128xf32>
      %15 = arith.addf %12, %14 : vector<16x128xf32>
      %c0_14 = arith.constant 0 : index
      %c0_15 = arith.constant 0 : index
      %16 = vector.load %arg5[%c0_14, %c0_15] : memref<16x128xf32, #tpu.memory_space<vmem>>, vector<16x128xf32>
      %17 = arith.addf %15, %16 : vector<16x128xf32>
      %cst_16 = arith.constant dense<0.000000e+00> : vector<16xf32>
      %18 = vector.multi_reduction <add>, %17, %cst_16 [1] : vector<16x128xf32> to vector<16xf32>
      %19 = vector.shape_cast %18 : vector<16xf32> to vector<16x1xf32>
      %cst_17 = arith.constant 1.280000e+02 : f32
      %20 = vector.broadcast %cst_17 : f32 to vector<16x1xf32>
      %21 = arith.divf %19, %20 : vector<16x1xf32>
      %22 = vector.broadcast %21 : vector<16x1xf32> to vector<16x128xf32>
      %23 = arith.subf %17, %22 : vector<16x128xf32>
      %24 = arith.mulf %23, %23 : vector<16x128xf32>
      %cst_18 = arith.constant dense<0.000000e+00> : vector<16xf32>
      %25 = vector.multi_reduction <add>, %24, %cst_18 [1] : vector<16x128xf32> to vector<16xf32>
      %26 = vector.shape_cast %25 : vector<16xf32> to vector<16x1xf32>
      %cst_19 = arith.constant 1.280000e+02 : f32
      %27 = vector.broadcast %cst_19 : f32 to vector<16x1xf32>
      %28 = arith.divf %26, %27 : vector<16x1xf32>
      %cst_20 = arith.constant 9.99999974E-6 : f32
      %29 = vector.broadcast %cst_20 : f32 to vector<16x1xf32>
      %30 = arith.addf %28, %29 : vector<16x1xf32>
      %31 = math.rsqrt %30 : vector<16x1xf32>
      %32 = vector.broadcast %31 : vector<16x1xf32> to vector<16x128xf32>
      %33 = arith.mulf %23, %32 : vector<16x128xf32>
      %c0_21 = arith.constant 0 : index
      %c0_22 = arith.constant 0 : index
      %34 = vector.load %arg6[%c0_21, %c0_22] : memref<1x128xf32, #tpu.memory_space<vmem>>, vector<1x128xf32>
      %35 = vector.broadcast %34 : vector<1x128xf32> to vector<16x128xf32>
      %36 = arith.mulf %33, %35 : vector<16x128xf32>
      %c0_23 = arith.constant 0 : index
      %c0_24 = arith.constant 0 : index
      %37 = vector.load %arg7[%c0_23, %c0_24] : memref<1x128xf32, #tpu.memory_space<vmem>>, vector<1x128xf32>
      %38 = vector.broadcast %37 : vector<1x128xf32> to vector<16x128xf32>
      %39 = arith.addf %36, %38 : vector<16x128xf32>
      %c0_25 = arith.constant 0 : index
      %c0_26 = arith.constant 0 : index
      %40 = vector.load %arg8[%c0_25, %c0_26] : memref<16x128xf32, #tpu.memory_space<vmem>>, vector<16x128xf32>
      tpu.vector_store %arg8[%c0_25, %c0_26], %39 {strides = array<i32>} : memref<16x128xf32, #tpu.memory_space<vmem>>, vector<16x128xf32>,
    } else {
    }
    return
  }
  func.func @transform_0(%arg0: i32, %arg1: i32) -> (i32, i32) {
    %c0_i32 = arith.constant 0 : i32
    return %arg0, %arg1 : i32, i32
  }
  func.func @transform_1(%arg0: i32, %arg1: i32) -> (i32, i32) {
    %c0_i32 = arith.constant 0 : i32
    %c0_i32_0 = arith.constant 0 : i32
    return %arg1, %c0_i32 : i32, i32
  }
  func.func @transform_2(%arg0: i32, %arg1: i32) -> (i32, i32) {
    %c0_i32 = arith.constant 0 : i32
    %c0_i32_0 = arith.constant 0 : i32
    %c0_i32_1 = arith.constant 0 : i32
    return %c0_i32, %c0_i32_0 : i32, i32
  }
  func.func @transform_3(%arg0: i32, %arg1: i32) -> (i32, i32) {
    %c0_i32 = arith.constant 0 : i32
    %c0_i32_0 = arith.constant 0 : i32
    return %arg0, %c0_i32 : i32, i32
  }
  func.func @transform_4(%arg0: i32, %arg1: i32) -> (i32, i32) {
    %c0_i32 = arith.constant 0 : i32
    %c0_i32_0 = arith.constant 0 : i32
    %c0_i32_1 = arith.constant 0 : i32
    return %c0_i32, %c0_i32_0 : i32, i32
  }
  func.func @transform_5(%arg0: i32, %arg1: i32) -> (i32, i32) {
    %c0_i32 = arith.constant 0 : i32
    %c0_i32_0 = arith.constant 0 : i32
    %c0_i32_1 = arith.constant 0 : i32
    return %c0_i32, %c0_i32_0 : i32, i32
  }
  func.func @transform_6(%arg0: i32, %arg1: i32) -> (i32, i32) {
    %c0_i32 = arith.constant 0 : i32
    %c0_i32_0 = arith.constant 0 : i32
    return %arg0, %c0_i32 : i32, i32
  }
}

module attributes {stable_mosaic.version = 11 : i64} {
  func.func @_linear_kernel(%arg0: i32, %arg1: i32, %arg2: i32, %arg3: memref<16x128xbf16, #tpu.memory_space<vmem>>, %arg4: memref<128x128xbf16, #tpu.memory_space<vmem>>, %arg5: memref<1x128xf32, #tpu.memory_space<vmem>>, %arg6: memref<16x128xbf16, #tpu.memory_space<vmem>>, %arg7: memref<16x128xf32, #tpu.memory_space<vmem>>) attributes {dimension_semantics = [#tpu.dimension_semantics<parallel>, #tpu.dimension_semantics<parallel>, #tpu.dimension_semantics<arbitrary>], iteration_bounds = array<i64: 1, 1, 1>, scalar_prefetch = 0 : i64, scratch_operands = 1 : i64, tpu.core_type = #tpu.core_type<tc>, window_params = [{transform_indices = @transform_0, window_bounds = array<i64: 16, 128>}, {transform_indices = @transform_1, window_bounds = array<i64: 128, 128>}, {transform_indices = @transform_2, window_bounds = array<i64: 1, 128>}, {transform_indices = @transform_3, window_bounds = array<i64: 16, 128>}]} {
    %c0_i32 = arith.constant 0 : i32
    %0 = arith.cmpi eq, %arg2, %c0_i32 : i32
    %1 = arith.extui %0 : i1 to i32
    %c0_i32_0 = arith.constant 0 : i32
    %2 = arith.cmpi ne, %1, %c0_i32_0 : i32
    scf.if %2 {
      %cst_10 = arith.constant 0.000000e+00 : f32
      %12 = vector.broadcast %cst_10 : f32 to vector<16x128xf32>
      %c0_11 = arith.constant 0 : index
      %c0_12 = arith.constant 0 : index
      %13 = vector.load %arg7[%c0_11, %c0_12] : memref<16x128xf32, #tpu.memory_space<vmem>>, vector<16x128xf32>
      tpu.vector_store %arg7[%c0_11, %c0_12], %12 {strides = array<i32>} : memref<16x128xf32, #tpu.memory_space<vmem>>, vector<16x128xf32>,
    } else {
    }
    %c0 = arith.constant 0 : index
    %c0_1 = arith.constant 0 : index
    %3 = vector.load %arg7[%c0, %c0_1] : memref<16x128xf32, #tpu.memory_space<vmem>>, vector<16x128xf32>
    %c0_2 = arith.constant 0 : index
    %c0_3 = arith.constant 0 : index
    %4 = vector.load %arg3[%c0_2, %c0_3] : memref<16x128xbf16, #tpu.memory_space<vmem>>, vector<16x128xbf16>
    %c0_4 = arith.constant 0 : index
    %c0_5 = arith.constant 0 : index
    %5 = vector.load %arg4[%c0_4, %c0_5] : memref<128x128xbf16, #tpu.memory_space<vmem>>, vector<128x128xbf16>
    %cst = arith.constant dense<0.000000e+00> : vector<16x128xf32>
    %6 = tpu.matmul %4, %5, %cst {dimension_numbers = #tpu.dot_dimension_numbers<[1], [0], [0], [1], [0, 0, 1, 1], [], []>} : vector<16x128xbf16>, vector<128x128xbf16>, vector<16x128xf32> -> vector<16x128xf32>
    %7 = arith.addf %3, %6 : vector<16x128xf32>
    %c0_6 = arith.constant 0 : index
    %c0_7 = arith.constant 0 : index
    %8 = vector.load %arg7[%c0_6, %c0_7] : memref<16x128xf32, #tpu.memory_space<vmem>>, vector<16x128xf32>
    tpu.vector_store %arg7[%c0_6, %c0_7], %7 {strides = array<i32>} : memref<16x128xf32, #tpu.memory_space<vmem>>, vector<16x128xf32>,
    %c0_i32_8 = arith.constant 0 : i32
    %9 = arith.cmpi eq, %arg2, %c0_i32_8 : i32
    %10 = arith.extui %9 : i1 to i32
    %c0_i32_9 = arith.constant 0 : i32
    %11 = arith.cmpi ne, %10, %c0_i32_9 : i32
    scf.if %11 {
      %c0_10 = arith.constant 0 : index
      %c0_11 = arith.constant 0 : index
      %12 = vector.load %arg7[%c0_10, %c0_11] : memref<16x128xf32, #tpu.memory_space<vmem>>, vector<16x128xf32>
      %c0_12 = arith.constant 0 : index
      %c0_13 = arith.constant 0 : index
      %13 = vector.load %arg5[%c0_12, %c0_13] : memref<1x128xf32, #tpu.memory_space<vmem>>, vector<1x128xf32>
      %14 = vector.broadcast %13 : vector<1x128xf32> to vector<16x128xf32>
      %15 = arith.addf %12, %14 : vector<16x128xf32>
      %16 = arith.truncf %15 : vector<16x128xf32> to vector<16x128xbf16>
      %c0_14 = arith.constant 0 : index
      %c0_15 = arith.constant 0 : index
      %17 = vector.load %arg6[%c0_14, %c0_15] : memref<16x128xbf16, #tpu.memory_space<vmem>>, vector<16x128xbf16>
      tpu.vector_store %arg6[%c0_14, %c0_15], %16 {strides = array<i32>} : memref<16x128xbf16, #tpu.memory_space<vmem>>, vector<16x128xbf16>,
    } else {
    }
    return
  }
  func.func @transform_0(%arg0: i32, %arg1: i32, %arg2: i32) -> (i32, i32) {
    %c0_i32 = arith.constant 0 : i32
    return %arg0, %arg2 : i32, i32
  }
  func.func @transform_1(%arg0: i32, %arg1: i32, %arg2: i32) -> (i32, i32) {
    %c0_i32 = arith.constant 0 : i32
    return %arg2, %arg1 : i32, i32
  }
  func.func @transform_2(%arg0: i32, %arg1: i32, %arg2: i32) -> (i32, i32) {
    %c0_i32 = arith.constant 0 : i32
    %c0_i32_0 = arith.constant 0 : i32
    return %c0_i32, %arg1 : i32, i32
  }
  func.func @transform_3(%arg0: i32, %arg1: i32, %arg2: i32) -> (i32, i32) {
    %c0_i32 = arith.constant 0 : i32
    return %arg0, %arg1 : i32, i32
  }
}

module attributes {stable_mosaic.version = 11 : i64} {
  func.func @_mha_kernel(%arg0: i32, %arg1: memref<1x8x128xbf16, #tpu.memory_space<vmem>>, %arg2: memref<1x16x128xbf16, #tpu.memory_space<vmem>>, %arg3: memref<1x16x128xbf16, #tpu.memory_space<vmem>>, %arg4: memref<1x8x128xbf16, #tpu.memory_space<vmem>>) attributes {dimension_semantics = [#tpu.dimension_semantics<parallel>], iteration_bounds = array<i64: 2>, scalar_prefetch = 0 : i64, scratch_operands = 0 : i64, tpu.core_type = #tpu.core_type<tc>, window_params = [{transform_indices = @transform_0, window_bounds = array<i64: 1, 8, 128>}, {transform_indices = @transform_1, window_bounds = array<i64: 1, 16, 128>}, {transform_indices = @transform_2, window_bounds = array<i64: 1, 16, 128>}, {transform_indices = @transform_3, window_bounds = array<i64: 1, 8, 128>}]} {
    %c0 = arith.constant 0 : index
    %c0_0 = arith.constant 0 : index
    %c0_1 = arith.constant 0 : index
    %0 = vector.load %arg1[%c0, %c0_0, %c0_1] : memref<1x8x128xbf16, #tpu.memory_space<vmem>>, vector<1x8x32xbf16>
    %1 = vector.shape_cast %0 : vector<1x8x32xbf16> to vector<8x32xbf16>
    %c0_2 = arith.constant 0 : index
    %c0_3 = arith.constant 0 : index
    %c0_4 = arith.constant 0 : index
    %2 = vector.load %arg2[%c0_2, %c0_3, %c0_4] : memref<1x16x128xbf16, #tpu.memory_space<vmem>>, vector<1x16x32xbf16>
    %3 = vector.shape_cast %2 : vector<1x16x32xbf16> to vector<16x32xbf16>
    %c0_5 = arith.constant 0 : index
    %c0_6 = arith.constant 0 : index
    %c0_7 = arith.constant 0 : index
    %4 = vector.load %arg3[%c0_5, %c0_6, %c0_7] : memref<1x16x128xbf16, #tpu.memory_space<vmem>>, vector<1x16x32xbf16>
    %5 = vector.shape_cast %4 : vector<1x16x32xbf16> to vector<16x32xbf16>
    %cst = arith.constant dense<0.000000e+00> : vector<8x16xf32>
    %6 = tpu.matmul %1, %3, %cst {dimension_numbers = #tpu.dot_dimension_numbers<[1], [1], [0], [0], [0, 0, 1, 0], [], []>} : vector<8x32xbf16>, vector<16x32xbf16>, vector<8x16xf32> -> vector<8x16xf32>
    %cst_8 = arith.constant 0.176776692 : f32
    %7 = vector.broadcast %cst_8 : f32 to vector<8x16xf32>
    %8 = arith.mulf %6, %7 : vector<8x16xf32>
    %cst_9 = arith.constant dense<0xFF800000> : vector<8xf32>
    %9 = vector.multi_reduction <maximumf>, %8, %cst_9 [1] : vector<8x16xf32> to vector<8xf32>
    %10 = vector.shape_cast %9 : vector<8xf32> to vector<8x1xf32>
    %11 = vector.broadcast %10 : vector<8x1xf32> to vector<8x16xf32>
    %12 = arith.subf %8, %11 : vector<8x16xf32>
    %13 = math.exp %12 : vector<8x16xf32>
    %cst_10 = arith.constant dense<0.000000e+00> : vector<8xf32>
    %14 = vector.multi_reduction <add>, %13, %cst_10 [1] : vector<8x16xf32> to vector<8xf32>
    %15 = vector.shape_cast %14 : vector<8xf32> to vector<8x1xf32>
    %16 = tpu.reciprocal %15 {approx = true} : vector<8x1xf32> -> vector<8x1xf32>
    %17 = vector.broadcast %16 : vector<8x1xf32> to vector<8x16xf32>
    %18 = arith.mulf %13, %17 : vector<8x16xf32>
    %19 = arith.truncf %18 : vector<8x16xf32> to vector<8x16xbf16>
    %cst_11 = arith.constant dense<0.000000e+00> : vector<8x32xf32>
    %20 = tpu.matmul %19, %5, %cst_11 {dimension_numbers = #tpu.dot_dimension_numbers<[1], [0], [0], [1], [0, 0, 1, 1], [], []>} : vector<8x16xbf16>, vector<16x32xbf16>, vector<8x32xf32> -> vector<8x32xf32>
    %c0_12 = arith.constant 0 : index
    %c0_13 = arith.constant 0 : index
    %c32 = arith.constant 32 : index
    %21 = vector.load %arg1[%c0_12, %c0_13, %c32] : memref<1x8x128xbf16, #tpu.memory_space<vmem>>, vector<1x8x32xbf16>
    %22 = vector.shape_cast %21 : vector<1x8x32xbf16> to vector<8x32xbf16>
    %c0_14 = arith.constant 0 : index
    %c0_15 = arith.constant 0 : index
    %c32_16 = arith.constant 32 : index
    %23 = vector.load %arg2[%c0_14, %c0_15, %c32_16] : memref<1x16x128xbf16, #tpu.memory_space<vmem>>, vector<1x16x32xbf16>
    %24 = vector.shape_cast %23 : vector<1x16x32xbf16> to vector<16x32xbf16>
    %c0_17 = arith.constant 0 : index
    %c0_18 = arith.constant 0 : index
    %c32_19 = arith.constant 32 : index
    %25 = vector.load %arg3[%c0_17, %c0_18, %c32_19] : memref<1x16x128xbf16, #tpu.memory_space<vmem>>, vector<1x16x32xbf16>
    %26 = vector.shape_cast %25 : vector<1x16x32xbf16> to vector<16x32xbf16>
    %cst_20 = arith.constant dense<0.000000e+00> : vector<8x16xf32>
    %27 = tpu.matmul %22, %24, %cst_20 {dimension_numbers = #tpu.dot_dimension_numbers<[1], [1], [0], [0], [0, 0, 1, 0], [], []>} : vector<8x32xbf16>, vector<16x32xbf16>, vector<8x16xf32> -> vector<8x16xf32>
    %cst_21 = arith.constant 0.176776692 : f32
    %28 = vector.broadcast %cst_21 : f32 to vector<8x16xf32>
    %29 = arith.mulf %27, %28 : vector<8x16xf32>
    %cst_22 = arith.constant dense<0xFF800000> : vector<8xf32>
    %30 = vector.multi_reduction <maximumf>, %29, %cst_22 [1] : vector<8x16xf32> to vector<8xf32>
    %31 = vector.shape_cast %30 : vector<8xf32> to vector<8x1xf32>
    %32 = vector.broadcast %31 : vector<8x1xf32> to vector<8x16xf32>
    %33 = arith.subf %29, %32 : vector<8x16xf32>
    %34 = math.exp %33 : vector<8x16xf32>
    %cst_23 = arith.constant dense<0.000000e+00> : vector<8xf32>
    %35 = vector.multi_reduction <add>, %34, %cst_23 [1] : vector<8x16xf32> to vector<8xf32>
    %36 = vector.shape_cast %35 : vector<8xf32> to vector<8x1xf32>
    %37 = tpu.reciprocal %36 {approx = true} : vector<8x1xf32> -> vector<8x1xf32>
    %38 = vector.broadcast %37 : vector<8x1xf32> to vector<8x16xf32>
    %39 = arith.mulf %34, %38 : vector<8x16xf32>
    %40 = arith.truncf %39 : vector<8x16xf32> to vector<8x16xbf16>
    %cst_24 = arith.constant dense<0.000000e+00> : vector<8x32xf32>
    %41 = tpu.matmul %40, %26, %cst_24 {dimension_numbers = #tpu.dot_dimension_numbers<[1], [0], [0], [1], [0, 0, 1, 1], [], []>} : vector<8x16xbf16>, vector<16x32xbf16>, vector<8x32xf32> -> vector<8x32xf32>
    %c0_25 = arith.constant 0 : index
    %c0_26 = arith.constant 0 : index
    %c64 = arith.constant 64 : index
    %42 = vector.load %arg1[%c0_25, %c0_26, %c64] : memref<1x8x128xbf16, #tpu.memory_space<vmem>>, vector<1x8x32xbf16>
    %43 = vector.shape_cast %42 : vector<1x8x32xbf16> to vector<8x32xbf16>
    %c0_27 = arith.constant 0 : index
    %c0_28 = arith.constant 0 : index
    %c64_29 = arith.constant 64 : index
    %44 = vector.load %arg2[%c0_27, %c0_28, %c64_29] : memref<1x16x128xbf16, #tpu.memory_space<vmem>>, vector<1x16x32xbf16>
    %45 = vector.shape_cast %44 : vector<1x16x32xbf16> to vector<16x32xbf16>
    %c0_30 = arith.constant 0 : index
    %c0_31 = arith.constant 0 : index
    %c64_32 = arith.constant 64 : index
    %46 = vector.load %arg3[%c0_30, %c0_31, %c64_32] : memref<1x16x128xbf16, #tpu.memory_space<vmem>>, vector<1x16x32xbf16>
    %47 = vector.shape_cast %46 : vector<1x16x32xbf16> to vector<16x32xbf16>
    %cst_33 = arith.constant dense<0.000000e+00> : vector<8x16xf32>
    %48 = tpu.matmul %43, %45, %cst_33 {dimension_numbers = #tpu.dot_dimension_numbers<[1], [1], [0], [0], [0, 0, 1, 0], [], []>} : vector<8x32xbf16>, vector<16x32xbf16>, vector<8x16xf32> -> vector<8x16xf32>
    %cst_34 = arith.constant 0.176776692 : f32
    %49 = vector.broadcast %cst_34 : f32 to vector<8x16xf32>
    %50 = arith.mulf %48, %49 : vector<8x16xf32>
    %cst_35 = arith.constant dense<0xFF800000> : vector<8xf32>
    %51 = vector.multi_reduction <maximumf>, %50, %cst_35 [1] : vector<8x16xf32> to vector<8xf32>
    %52 = vector.shape_cast %51 : vector<8xf32> to vector<8x1xf32>
    %53 = vector.broadcast %52 : vector<8x1xf32> to vector<8x16xf32>
    %54 = arith.subf %50, %53 : vector<8x16xf32>
    %55 = math.exp %54 : vector<8x16xf32>
    %cst_36 = arith.constant dense<0.000000e+00> : vector<8xf32>
    %56 = vector.multi_reduction <add>, %55, %cst_36 [1] : vector<8x16xf32> to vector<8xf32>
    %57 = vector.shape_cast %56 : vector<8xf32> to vector<8x1xf32>
    %58 = tpu.reciprocal %57 {approx = true} : vector<8x1xf32> -> vector<8x1xf32>
    %59 = vector.broadcast %58 : vector<8x1xf32> to vector<8x16xf32>
    %60 = arith.mulf %55, %59 : vector<8x16xf32>
    %61 = arith.truncf %60 : vector<8x16xf32> to vector<8x16xbf16>
    %cst_37 = arith.constant dense<0.000000e+00> : vector<8x32xf32>
    %62 = tpu.matmul %61, %47, %cst_37 {dimension_numbers = #tpu.dot_dimension_numbers<[1], [0], [0], [1], [0, 0, 1, 1], [], []>} : vector<8x16xbf16>, vector<16x32xbf16>, vector<8x32xf32> -> vector<8x32xf32>
    %c0_38 = arith.constant 0 : index
    %c0_39 = arith.constant 0 : index
    %c96 = arith.constant 96 : index
    %63 = vector.load %arg1[%c0_38, %c0_39, %c96] : memref<1x8x128xbf16, #tpu.memory_space<vmem>>, vector<1x8x32xbf16>
    %64 = vector.shape_cast %63 : vector<1x8x32xbf16> to vector<8x32xbf16>
    %c0_40 = arith.constant 0 : index
    %c0_41 = arith.constant 0 : index
    %c96_42 = arith.constant 96 : index
    %65 = vector.load %arg2[%c0_40, %c0_41, %c96_42] : memref<1x16x128xbf16, #tpu.memory_space<vmem>>, vector<1x16x32xbf16>
    %66 = vector.shape_cast %65 : vector<1x16x32xbf16> to vector<16x32xbf16>
    %c0_43 = arith.constant 0 : index
    %c0_44 = arith.constant 0 : index
    %c96_45 = arith.constant 96 : index
    %67 = vector.load %arg3[%c0_43, %c0_44, %c96_45] : memref<1x16x128xbf16, #tpu.memory_space<vmem>>, vector<1x16x32xbf16>
    %68 = vector.shape_cast %67 : vector<1x16x32xbf16> to vector<16x32xbf16>
    %cst_46 = arith.constant dense<0.000000e+00> : vector<8x16xf32>
    %69 = tpu.matmul %64, %66, %cst_46 {dimension_numbers = #tpu.dot_dimension_numbers<[1], [1], [0], [0], [0, 0, 1, 0], [], []>} : vector<8x32xbf16>, vector<16x32xbf16>, vector<8x16xf32> -> vector<8x16xf32>
    %cst_47 = arith.constant 0.176776692 : f32
    %70 = vector.broadcast %cst_47 : f32 to vector<8x16xf32>
    %71 = arith.mulf %69, %70 : vector<8x16xf32>
    %cst_48 = arith.constant dense<0xFF800000> : vector<8xf32>
    %72 = vector.multi_reduction <maximumf>, %71, %cst_48 [1] : vector<8x16xf32> to vector<8xf32>
    %73 = vector.shape_cast %72 : vector<8xf32> to vector<8x1xf32>
    %74 = vector.broadcast %73 : vector<8x1xf32> to vector<8x16xf32>
    %75 = arith.subf %71, %74 : vector<8x16xf32>
    %76 = math.exp %75 : vector<8x16xf32>
    %cst_49 = arith.constant dense<0.000000e+00> : vector<8xf32>
    %77 = vector.multi_reduction <add>, %76, %cst_49 [1] : vector<8x16xf32> to vector<8xf32>
    %78 = vector.shape_cast %77 : vector<8xf32> to vector<8x1xf32>
    %79 = tpu.reciprocal %78 {approx = true} : vector<8x1xf32> -> vector<8x1xf32>
    %80 = vector.broadcast %79 : vector<8x1xf32> to vector<8x16xf32>
    %81 = arith.mulf %76, %80 : vector<8x16xf32>
    %82 = arith.truncf %81 : vector<8x16xf32> to vector<8x16xbf16>
    %cst_50 = arith.constant dense<0.000000e+00> : vector<8x32xf32>
    %83 = tpu.matmul %82, %68, %cst_50 {dimension_numbers = #tpu.dot_dimension_numbers<[1], [0], [0], [1], [0, 0, 1, 1], [], []>} : vector<8x16xbf16>, vector<16x32xbf16>, vector<8x32xf32> -> vector<8x32xf32>
    %84 = tpu.concatenate %20, %41, %62, %83 in 1 : vector<8x32xf32>, vector<8x32xf32>, vector<8x32xf32>, vector<8x32xf32> -> vector<8x128xf32>
    %85 = arith.truncf %84 : vector<8x128xf32> to vector<8x128xbf16>
    %c0_51 = arith.constant 0 : index
    %c0_52 = arith.constant 0 : index
    %c0_53 = arith.constant 0 : index
    %86 = vector.load %arg4[%c0_51, %c0_52, %c0_53] : memref<1x8x128xbf16, #tpu.memory_space<vmem>>, vector<1x8x128xbf16>
    %87 = vector.shape_cast %86 : vector<1x8x128xbf16> to vector<8x128xbf16>
    %88 = vector.shape_cast %85 : vector<8x128xbf16> to vector<1x8x128xbf16>
    tpu.vector_store %arg4[%c0_51, %c0_52, %c0_53], %88 {strides = array<i32>} : memref<1x8x128xbf16, #tpu.memory_space<vmem>>, vector<1x8x128xbf16>,
    return
  }
  func.func @transform_0(%arg0: i32) -> (i32, i32, i32) {
    %c0_i32 = arith.constant 0 : i32
    %c0_i32_0 = arith.constant 0 : i32
    %c0_i32_1 = arith.constant 0 : i32
    return %arg0, %c0_i32, %c0_i32_0 : i32, i32, i32
  }
  func.func @transform_1(%arg0: i32) -> (i32, i32, i32) {
    %c0_i32 = arith.constant 0 : i32
    %c0_i32_0 = arith.constant 0 : i32
    %c0_i32_1 = arith.constant 0 : i32
    return %arg0, %c0_i32, %c0_i32_0 : i32, i32, i32
  }
  func.func @transform_2(%arg0: i32) -> (i32, i32, i32) {
    %c0_i32 = arith.constant 0 : i32
    %c1_i32 = arith.constant 1 : i32
    %c0_i32_0 = arith.constant 0 : i32
    return %arg0, %c0_i32, %c1_i32 : i32, i32, i32
  }
  func.func @transform_3(%arg0: i32) -> (i32, i32, i32) {
    %c0_i32 = arith.constant 0 : i32
    %c0_i32_0 = arith.constant 0 : i32
    %c0_i32_1 = arith.constant 0 : i32
    return %arg0, %c0_i32, %c0_i32_0 : i32, i32, i32
  }
}

module attributes {stable_mosaic.version = 11 : i64} {
  func.func @_linear_kernel(%arg0: i32, %arg1: i32, %arg2: i32, %arg3: memref<32x128xbf16, #tpu.memory_space<vmem>>, %arg4: memref<128x256xbf16, #tpu.memory_space<vmem>>, %arg5: memref<1x256xf32, #tpu.memory_space<vmem>>, %arg6: memref<32x256xbf16, #tpu.memory_space<vmem>>, %arg7: memref<32x256xf32, #tpu.memory_space<vmem>>) attributes {dimension_semantics = [#tpu.dimension_semantics<parallel>, #tpu.dimension_semantics<parallel>, #tpu.dimension_semantics<arbitrary>], iteration_bounds = array<i64: 1, 1, 1>, scalar_prefetch = 0 : i64, scratch_operands = 1 : i64, tpu.core_type = #tpu.core_type<tc>, window_params = [{transform_indices = @transform_0, window_bounds = array<i64: 32, 128>}, {transform_indices = @transform_1, window_bounds = array<i64: 128, 256>}, {transform_indices = @transform_2, window_bounds = array<i64: 1, 256>}, {transform_indices = @transform_3, window_bounds = array<i64: 32, 256>}]} {
    %c0_i32 = arith.constant 0 : i32
    %0 = arith.cmpi eq, %arg2, %c0_i32 : i32
    %1 = arith.extui %0 : i1 to i32
    %c0_i32_0 = arith.constant 0 : i32
    %2 = arith.cmpi ne, %1, %c0_i32_0 : i32
    scf.if %2 {
      %cst_10 = arith.constant 0.000000e+00 : f32
      %12 = vector.broadcast %cst_10 : f32 to vector<32x256xf32>
      %c0_11 = arith.constant 0 : index
      %c0_12 = arith.constant 0 : index
      %13 = vector.load %arg7[%c0_11, %c0_12] : memref<32x256xf32, #tpu.memory_space<vmem>>, vector<32x256xf32>
      tpu.vector_store %arg7[%c0_11, %c0_12], %12 {strides = array<i32>} : memref<32x256xf32, #tpu.memory_space<vmem>>, vector<32x256xf32>,
    } else {
    }
    %c0 = arith.constant 0 : index
    %c0_1 = arith.constant 0 : index
    %3 = vector.load %arg7[%c0, %c0_1] : memref<32x256xf32, #tpu.memory_space<vmem>>, vector<32x256xf32>
    %c0_2 = arith.constant 0 : index
    %c0_3 = arith.constant 0 : index
    %4 = vector.load %arg3[%c0_2, %c0_3] : memref<32x128xbf16, #tpu.memory_space<vmem>>, vector<32x128xbf16>
    %c0_4 = arith.constant 0 : index
    %c0_5 = arith.constant 0 : index
    %5 = vector.load %arg4[%c0_4, %c0_5] : memref<128x256xbf16, #tpu.memory_space<vmem>>, vector<128x256xbf16>
    %cst = arith.constant dense<0.000000e+00> : vector<32x256xf32>
    %6 = tpu.matmul %4, %5, %cst {dimension_numbers = #tpu.dot_dimension_numbers<[1], [0], [0], [1], [0, 0, 1, 1], [], []>} : vector<32x128xbf16>, vector<128x256xbf16>, vector<32x256xf32> -> vector<32x256xf32>
    %7 = arith.addf %3, %6 : vector<32x256xf32>
    %c0_6 = arith.constant 0 : index
    %c0_7 = arith.constant 0 : index
    %8 = vector.load %arg7[%c0_6, %c0_7] : memref<32x256xf32, #tpu.memory_space<vmem>>, vector<32x256xf32>
    tpu.vector_store %arg7[%c0_6, %c0_7], %7 {strides = array<i32>} : memref<32x256xf32, #tpu.memory_space<vmem>>, vector<32x256xf32>,
    %c0_i32_8 = arith.constant 0 : i32
    %9 = arith.cmpi eq, %arg2, %c0_i32_8 : i32
    %10 = arith.extui %9 : i1 to i32
    %c0_i32_9 = arith.constant 0 : i32
    %11 = arith.cmpi ne, %10, %c0_i32_9 : i32
    scf.if %11 {
      %c0_10 = arith.constant 0 : index
      %c0_11 = arith.constant 0 : index
      %12 = vector.load %arg7[%c0_10, %c0_11] : memref<32x256xf32, #tpu.memory_space<vmem>>, vector<32x256xf32>
      %c0_12 = arith.constant 0 : index
      %c0_13 = arith.constant 0 : index
      %13 = vector.load %arg5[%c0_12, %c0_13] : memref<1x256xf32, #tpu.memory_space<vmem>>, vector<1x256xf32>
      %14 = vector.broadcast %13 : vector<1x256xf32> to vector<32x256xf32>
      %15 = arith.addf %12, %14 : vector<32x256xf32>
      %16 = arith.truncf %15 : vector<32x256xf32> to vector<32x256xbf16>
      %c0_14 = arith.constant 0 : index
      %c0_15 = arith.constant 0 : index
      %17 = vector.load %arg6[%c0_14, %c0_15] : memref<32x256xbf16, #tpu.memory_space<vmem>>, vector<32x256xbf16>
      tpu.vector_store %arg6[%c0_14, %c0_15], %16 {strides = array<i32>} : memref<32x256xbf16, #tpu.memory_space<vmem>>, vector<32x256xbf16>,
    } else {
    }
    return
  }
  func.func @transform_0(%arg0: i32, %arg1: i32, %arg2: i32) -> (i32, i32) {
    %c0_i32 = arith.constant 0 : i32
    return %arg0, %arg2 : i32, i32
  }
  func.func @transform_1(%arg0: i32, %arg1: i32, %arg2: i32) -> (i32, i32) {
    %c0_i32 = arith.constant 0 : i32
    return %arg2, %arg1 : i32, i32
  }
  func.func @transform_2(%arg0: i32, %arg1: i32, %arg2: i32) -> (i32, i32) {
    %c0_i32 = arith.constant 0 : i32
    %c0_i32_0 = arith.constant 0 : i32
    return %c0_i32, %arg1 : i32, i32
  }
  func.func @transform_3(%arg0: i32, %arg1: i32, %arg2: i32) -> (i32, i32) {
    %c0_i32 = arith.constant 0 : i32
    return %arg0, %arg1 : i32, i32
  }
}

module attributes {stable_mosaic.version = 11 : i64} {
  func.func @_linear_res_ln_kernel(%arg0: i32, %arg1: i32, %arg2: memref<16x256xbf16, #tpu.memory_space<vmem>>, %arg3: memref<256x128xbf16, #tpu.memory_space<vmem>>, %arg4: memref<1x128xf32, #tpu.memory_space<vmem>>, %arg5: memref<16x128xf32, #tpu.memory_space<vmem>>, %arg6: memref<1x128xf32, #tpu.memory_space<vmem>>, %arg7: memref<1x128xf32, #tpu.memory_space<vmem>>, %arg8: memref<16x128xf32, #tpu.memory_space<vmem>>) attributes {dimension_semantics = [#tpu.dimension_semantics<parallel>, #tpu.dimension_semantics<arbitrary>], iteration_bounds = array<i64: 1, 1>, scalar_prefetch = 0 : i64, scratch_operands = 0 : i64, tpu.core_type = #tpu.core_type<tc>, window_params = [{transform_indices = @transform_0, window_bounds = array<i64: 16, 256>}, {transform_indices = @transform_1, window_bounds = array<i64: 256, 128>}, {pipeline_mode = #tpu.pipeline_mode<synchronous>, transform_indices = @transform_2, window_bounds = array<i64: 1, 128>}, {transform_indices = @transform_3, window_bounds = array<i64: 16, 128>}, {pipeline_mode = #tpu.pipeline_mode<synchronous>, transform_indices = @transform_4, window_bounds = array<i64: 1, 128>}, {pipeline_mode = #tpu.pipeline_mode<synchronous>, transform_indices = @transform_5, window_bounds = array<i64: 1, 128>}, {transform_indices = @transform_6, window_bounds = array<i64: 16, 128>}]} {
    %c0_i32 = arith.constant 0 : i32
    %0 = arith.cmpi eq, %arg1, %c0_i32 : i32
    %1 = arith.extui %0 : i1 to i32
    %c0_i32_0 = arith.constant 0 : i32
    %2 = arith.cmpi ne, %1, %c0_i32_0 : i32
    scf.if %2 {
      %cst_10 = arith.constant 0.000000e+00 : f32
      %12 = vector.broadcast %cst_10 : f32 to vector<16x128xf32>
      %c0_11 = arith.constant 0 : index
      %c0_12 = arith.constant 0 : index
      %13 = vector.load %arg8[%c0_11, %c0_12] : memref<16x128xf32, #tpu.memory_space<vmem>>, vector<16x128xf32>
      tpu.vector_store %arg8[%c0_11, %c0_12], %12 {strides = array<i32>} : memref<16x128xf32, #tpu.memory_space<vmem>>, vector<16x128xf32>,
    } else {
    }
    %c0 = arith.constant 0 : index
    %c0_1 = arith.constant 0 : index
    %3 = vector.load %arg8[%c0, %c0_1] : memref<16x128xf32, #tpu.memory_space<vmem>>, vector<16x128xf32>
    %c0_2 = arith.constant 0 : index
    %c0_3 = arith.constant 0 : index
    %4 = vector.load %arg2[%c0_2, %c0_3] : memref<16x256xbf16, #tpu.memory_space<vmem>>, vector<16x256xbf16>
    %c0_4 = arith.constant 0 : index
    %c0_5 = arith.constant 0 : index
    %5 = vector.load %arg3[%c0_4, %c0_5] : memref<256x128xbf16, #tpu.memory_space<vmem>>, vector<256x128xbf16>
    %cst = arith.constant dense<0.000000e+00> : vector<16x128xf32>
    %6 = tpu.matmul %4, %5, %cst {dimension_numbers = #tpu.dot_dimension_numbers<[1], [0], [0], [1], [0, 0, 1, 1], [], []>} : vector<16x256xbf16>, vector<256x128xbf16>, vector<16x128xf32> -> vector<16x128xf32>
    %7 = arith.addf %3, %6 : vector<16x128xf32>
    %c0_6 = arith.constant 0 : index
    %c0_7 = arith.constant 0 : index
    %8 = vector.load %arg8[%c0_6, %c0_7] : memref<16x128xf32, #tpu.memory_space<vmem>>, vector<16x128xf32>
    tpu.vector_store %arg8[%c0_6, %c0_7], %7 {strides = array<i32>} : memref<16x128xf32, #tpu.memory_space<vmem>>, vector<16x128xf32>,
    %c0_i32_8 = arith.constant 0 : i32
    %9 = arith.cmpi eq, %arg1, %c0_i32_8 : i32
    %10 = arith.extui %9 : i1 to i32
    %c0_i32_9 = arith.constant 0 : i32
    %11 = arith.cmpi ne, %10, %c0_i32_9 : i32
    scf.if %11 {
      %c0_10 = arith.constant 0 : index
      %c0_11 = arith.constant 0 : index
      %12 = vector.load %arg8[%c0_10, %c0_11] : memref<16x128xf32, #tpu.memory_space<vmem>>, vector<16x128xf32>
      %c0_12 = arith.constant 0 : index
      %c0_13 = arith.constant 0 : index
      %13 = vector.load %arg4[%c0_12, %c0_13] : memref<1x128xf32, #tpu.memory_space<vmem>>, vector<1x128xf32>
      %14 = vector.broadcast %13 : vector<1x128xf32> to vector<16x128xf32>
      %15 = arith.addf %12, %14 : vector<16x128xf32>
      %c0_14 = arith.constant 0 : index
      %c0_15 = arith.constant 0 : index
      %16 = vector.load %arg5[%c0_14, %c0_15] : memref<16x128xf32, #tpu.memory_space<vmem>>, vector<16x128xf32>
      %17 = arith.addf %15, %16 : vector<16x128xf32>
      %cst_16 = arith.constant dense<0.000000e+00> : vector<16xf32>
      %18 = vector.multi_reduction <add>, %17, %cst_16 [1] : vector<16x128xf32> to vector<16xf32>
      %19 = vector.shape_cast %18 : vector<16xf32> to vector<16x1xf32>
      %cst_17 = arith.constant 1.280000e+02 : f32
      %20 = vector.broadcast %cst_17 : f32 to vector<16x1xf32>
      %21 = arith.divf %19, %20 : vector<16x1xf32>
      %22 = vector.broadcast %21 : vector<16x1xf32> to vector<16x128xf32>
      %23 = arith.subf %17, %22 : vector<16x128xf32>
      %24 = arith.mulf %23, %23 : vector<16x128xf32>
      %cst_18 = arith.constant dense<0.000000e+00> : vector<16xf32>
      %25 = vector.multi_reduction <add>, %24, %cst_18 [1] : vector<16x128xf32> to vector<16xf32>
      %26 = vector.shape_cast %25 : vector<16xf32> to vector<16x1xf32>
      %cst_19 = arith.constant 1.280000e+02 : f32
      %27 = vector.broadcast %cst_19 : f32 to vector<16x1xf32>
      %28 = arith.divf %26, %27 : vector<16x1xf32>
      %cst_20 = arith.constant 9.99999974E-6 : f32
      %29 = vector.broadcast %cst_20 : f32 to vector<16x1xf32>
      %30 = arith.addf %28, %29 : vector<16x1xf32>
      %31 = math.rsqrt %30 : vector<16x1xf32>
      %32 = vector.broadcast %31 : vector<16x1xf32> to vector<16x128xf32>
      %33 = arith.mulf %23, %32 : vector<16x128xf32>
      %c0_21 = arith.constant 0 : index
      %c0_22 = arith.constant 0 : index
      %34 = vector.load %arg6[%c0_21, %c0_22] : memref<1x128xf32, #tpu.memory_space<vmem>>, vector<1x128xf32>
      %35 = vector.broadcast %34 : vector<1x128xf32> to vector<16x128xf32>
      %36 = arith.mulf %33, %35 : vector<16x128xf32>
      %c0_23 = arith.constant 0 : index
      %c0_24 = arith.constant 0 : index
      %37 = vector.load %arg7[%c0_23, %c0_24] : memref<1x128xf32, #tpu.memory_space<vmem>>, vector<1x128xf32>
      %38 = vector.broadcast %37 : vector<1x128xf32> to vector<16x128xf32>
      %39 = arith.addf %36, %38 : vector<16x128xf32>
      %c0_25 = arith.constant 0 : index
      %c0_26 = arith.constant 0 : index
      %40 = vector.load %arg8[%c0_25, %c0_26] : memref<16x128xf32, #tpu.memory_space<vmem>>, vector<16x128xf32>
      tpu.vector_store %arg8[%c0_25, %c0_26], %39 {strides = array<i32>} : memref<16x128xf32, #tpu.memory_space<vmem>>, vector<16x128xf32>,
    } else {
    }
    return
  }
  func.func @transform_0(%arg0: i32, %arg1: i32) -> (i32, i32) {
    %c0_i32 = arith.constant 0 : i32
    return %arg0, %arg1 : i32, i32
  }
  func.func @transform_1(%arg0: i32, %arg1: i32) -> (i32, i32) {
    %c0_i32 = arith.constant 0 : i32
    %c0_i32_0 = arith.constant 0 : i32
    return %arg1, %c0_i32 : i32, i32
  }
  func.func @transform_2(%arg0: i32, %arg1: i32) -> (i32, i32) {
    %c0_i32 = arith.constant 0 : i32
    %c0_i32_0 = arith.constant 0 : i32
    %c0_i32_1 = arith.constant 0 : i32
    return %c0_i32, %c0_i32_0 : i32, i32
  }
  func.func @transform_3(%arg0: i32, %arg1: i32) -> (i32, i32) {
    %c0_i32 = arith.constant 0 : i32
    %c0_i32_0 = arith.constant 0 : i32
    return %arg0, %c0_i32 : i32, i32
  }
  func.func @transform_4(%arg0: i32, %arg1: i32) -> (i32, i32) {
    %c0_i32 = arith.constant 0 : i32
    %c0_i32_0 = arith.constant 0 : i32
    %c0_i32_1 = arith.constant 0 : i32
    return %c0_i32, %c0_i32_0 : i32, i32
  }
  func.func @transform_5(%arg0: i32, %arg1: i32) -> (i32, i32) {
    %c0_i32 = arith.constant 0 : i32
    %c0_i32_0 = arith.constant 0 : i32
    %c0_i32_1 = arith.constant 0 : i32
    return %c0_i32, %c0_i32_0 : i32, i32
  }
  func.func @transform_6(%arg0: i32, %arg1: i32) -> (i32, i32) {
    %c0_i32 = arith.constant 0 : i32
    %c0_i32_0 = arith.constant 0 : i32
    return %arg0, %c0_i32 : i32, i32
  }
}

module attributes {stable_mosaic.version = 11 : i64} {
  func.func @_linear_kernel(%arg0: i32, %arg1: i32, %arg2: i32, %arg3: memref<16x128xbf16, #tpu.memory_space<vmem>>, %arg4: memref<128x256xbf16, #tpu.memory_space<vmem>>, %arg5: memref<1x256xf32, #tpu.memory_space<vmem>>, %arg6: memref<16x256xbf16, #tpu.memory_space<vmem>>, %arg7: memref<16x256xf32, #tpu.memory_space<vmem>>) attributes {dimension_semantics = [#tpu.dimension_semantics<parallel>, #tpu.dimension_semantics<parallel>, #tpu.dimension_semantics<arbitrary>], iteration_bounds = array<i64: 1, 1, 1>, scalar_prefetch = 0 : i64, scratch_operands = 1 : i64, tpu.core_type = #tpu.core_type<tc>, window_params = [{transform_indices = @transform_0, window_bounds = array<i64: 16, 128>}, {transform_indices = @transform_1, window_bounds = array<i64: 128, 256>}, {transform_indices = @transform_2, window_bounds = array<i64: 1, 256>}, {transform_indices = @transform_3, window_bounds = array<i64: 16, 256>}]} {
    %c0_i32 = arith.constant 0 : i32
    %0 = arith.cmpi eq, %arg2, %c0_i32 : i32
    %1 = arith.extui %0 : i1 to i32
    %c0_i32_0 = arith.constant 0 : i32
    %2 = arith.cmpi ne, %1, %c0_i32_0 : i32
    scf.if %2 {
      %cst_10 = arith.constant 0.000000e+00 : f32
      %12 = vector.broadcast %cst_10 : f32 to vector<16x256xf32>
      %c0_11 = arith.constant 0 : index
      %c0_12 = arith.constant 0 : index
      %13 = vector.load %arg7[%c0_11, %c0_12] : memref<16x256xf32, #tpu.memory_space<vmem>>, vector<16x256xf32>
      tpu.vector_store %arg7[%c0_11, %c0_12], %12 {strides = array<i32>} : memref<16x256xf32, #tpu.memory_space<vmem>>, vector<16x256xf32>,
    } else {
    }
    %c0 = arith.constant 0 : index
    %c0_1 = arith.constant 0 : index
    %3 = vector.load %arg7[%c0, %c0_1] : memref<16x256xf32, #tpu.memory_space<vmem>>, vector<16x256xf32>
    %c0_2 = arith.constant 0 : index
    %c0_3 = arith.constant 0 : index
    %4 = vector.load %arg3[%c0_2, %c0_3] : memref<16x128xbf16, #tpu.memory_space<vmem>>, vector<16x128xbf16>
    %c0_4 = arith.constant 0 : index
    %c0_5 = arith.constant 0 : index
    %5 = vector.load %arg4[%c0_4, %c0_5] : memref<128x256xbf16, #tpu.memory_space<vmem>>, vector<128x256xbf16>
    %cst = arith.constant dense<0.000000e+00> : vector<16x256xf32>
    %6 = tpu.matmul %4, %5, %cst {dimension_numbers = #tpu.dot_dimension_numbers<[1], [0], [0], [1], [0, 0, 1, 1], [], []>} : vector<16x128xbf16>, vector<128x256xbf16>, vector<16x256xf32> -> vector<16x256xf32>
    %7 = arith.addf %3, %6 : vector<16x256xf32>
    %c0_6 = arith.constant 0 : index
    %c0_7 = arith.constant 0 : index
    %8 = vector.load %arg7[%c0_6, %c0_7] : memref<16x256xf32, #tpu.memory_space<vmem>>, vector<16x256xf32>
    tpu.vector_store %arg7[%c0_6, %c0_7], %7 {strides = array<i32>} : memref<16x256xf32, #tpu.memory_space<vmem>>, vector<16x256xf32>,
    %c0_i32_8 = arith.constant 0 : i32
    %9 = arith.cmpi eq, %arg2, %c0_i32_8 : i32
    %10 = arith.extui %9 : i1 to i32
    %c0_i32_9 = arith.constant 0 : i32
    %11 = arith.cmpi ne, %10, %c0_i32_9 : i32
    scf.if %11 {
      %c0_10 = arith.constant 0 : index
      %c0_11 = arith.constant 0 : index
      %12 = vector.load %arg7[%c0_10, %c0_11] : memref<16x256xf32, #tpu.memory_space<vmem>>, vector<16x256xf32>
      %c0_12 = arith.constant 0 : index
      %c0_13 = arith.constant 0 : index
      %13 = vector.load %arg5[%c0_12, %c0_13] : memref<1x256xf32, #tpu.memory_space<vmem>>, vector<1x256xf32>
      %14 = vector.broadcast %13 : vector<1x256xf32> to vector<16x256xf32>
      %15 = arith.addf %12, %14 : vector<16x256xf32>
      %cst_14 = arith.constant 0.000000e+00 : f32
      %16 = vector.broadcast %cst_14 : f32 to vector<16x256xf32>
      %17 = arith.maximumf %15, %16 : vector<16x256xf32>
      %18 = arith.truncf %17 : vector<16x256xf32> to vector<16x256xbf16>
      %c0_15 = arith.constant 0 : index
      %c0_16 = arith.constant 0 : index
      %19 = vector.load %arg6[%c0_15, %c0_16] : memref<16x256xbf16, #tpu.memory_space<vmem>>, vector<16x256xbf16>
      tpu.vector_store %arg6[%c0_15, %c0_16], %18 {strides = array<i32>} : memref<16x256xbf16, #tpu.memory_space<vmem>>, vector<16x256xbf16>,
    } else {
    }
    return
  }
  func.func @transform_0(%arg0: i32, %arg1: i32, %arg2: i32) -> (i32, i32) {
    %c0_i32 = arith.constant 0 : i32
    return %arg0, %arg2 : i32, i32
  }
  func.func @transform_1(%arg0: i32, %arg1: i32, %arg2: i32) -> (i32, i32) {
    %c0_i32 = arith.constant 0 : i32
    return %arg2, %arg1 : i32, i32
  }
  func.func @transform_2(%arg0: i32, %arg1: i32, %arg2: i32) -> (i32, i32) {
    %c0_i32 = arith.constant 0 : i32
    %c0_i32_0 = arith.constant 0 : i32
    return %c0_i32, %arg1 : i32, i32
  }
  func.func @transform_3(%arg0: i32, %arg1: i32, %arg2: i32) -> (i32, i32) {
    %c0_i32 = arith.constant 0 : i32
    return %arg0, %arg1 : i32, i32
  }
}

module attributes {stable_mosaic.version = 11 : i64} {
  func.func @_ln_kernel(%arg0: i32, %arg1: memref<16x128xf32, #tpu.memory_space<vmem>>, %arg2: memref<1x128xf32, #tpu.memory_space<vmem>>, %arg3: memref<1x128xf32, #tpu.memory_space<vmem>>, %arg4: memref<16x128xf32, #tpu.memory_space<vmem>>) attributes {dimension_semantics = [#tpu.dimension_semantics<parallel>], iteration_bounds = array<i64: 1>, scalar_prefetch = 0 : i64, scratch_operands = 0 : i64, tpu.core_type = #tpu.core_type<tc>, window_params = [{transform_indices = @transform_0, window_bounds = array<i64: 16, 128>}, {pipeline_mode = #tpu.pipeline_mode<synchronous>, transform_indices = @transform_1, window_bounds = array<i64: 1, 128>}, {pipeline_mode = #tpu.pipeline_mode<synchronous>, transform_indices = @transform_2, window_bounds = array<i64: 1, 128>}, {transform_indices = @transform_3, window_bounds = array<i64: 16, 128>}]} {
    %c0 = arith.constant 0 : index
    %c0_0 = arith.constant 0 : index
    %0 = vector.load %arg1[%c0, %c0_0] : memref<16x128xf32, #tpu.memory_space<vmem>>, vector<16x128xf32>
    %cst = arith.constant dense<0.000000e+00> : vector<16xf32>
    %1 = vector.multi_reduction <add>, %0, %cst [1] : vector<16x128xf32> to vector<16xf32>
    %2 = vector.shape_cast %1 : vector<16xf32> to vector<16x1xf32>
    %cst_1 = arith.constant 1.280000e+02 : f32
    %3 = vector.broadcast %cst_1 : f32 to vector<16x1xf32>
    %4 = arith.divf %2, %3 : vector<16x1xf32>
    %5 = vector.broadcast %4 : vector<16x1xf32> to vector<16x128xf32>
    %6 = arith.subf %0, %5 : vector<16x128xf32>
    %7 = arith.mulf %6, %6 : vector<16x128xf32>
    %cst_2 = arith.constant dense<0.000000e+00> : vector<16xf32>
    %8 = vector.multi_reduction <add>, %7, %cst_2 [1] : vector<16x128xf32> to vector<16xf32>
    %9 = vector.shape_cast %8 : vector<16xf32> to vector<16x1xf32>
    %cst_3 = arith.constant 1.280000e+02 : f32
    %10 = vector.broadcast %cst_3 : f32 to vector<16x1xf32>
    %11 = arith.divf %9, %10 : vector<16x1xf32>
    %cst_4 = arith.constant 9.99999974E-6 : f32
    %12 = vector.broadcast %cst_4 : f32 to vector<16x1xf32>
    %13 = arith.addf %11, %12 : vector<16x1xf32>
    %14 = math.rsqrt %13 : vector<16x1xf32>
    %15 = vector.broadcast %14 : vector<16x1xf32> to vector<16x128xf32>
    %16 = arith.mulf %6, %15 : vector<16x128xf32>
    %c0_5 = arith.constant 0 : index
    %c0_6 = arith.constant 0 : index
    %17 = vector.load %arg2[%c0_5, %c0_6] : memref<1x128xf32, #tpu.memory_space<vmem>>, vector<1x128xf32>
    %18 = vector.broadcast %17 : vector<1x128xf32> to vector<16x128xf32>
    %19 = arith.mulf %16, %18 : vector<16x128xf32>
    %c0_7 = arith.constant 0 : index
    %c0_8 = arith.constant 0 : index
    %20 = vector.load %arg3[%c0_7, %c0_8] : memref<1x128xf32, #tpu.memory_space<vmem>>, vector<1x128xf32>
    %21 = vector.broadcast %20 : vector<1x128xf32> to vector<16x128xf32>
    %22 = arith.addf %19, %21 : vector<16x128xf32>
    %c0_9 = arith.constant 0 : index
    %c0_10 = arith.constant 0 : index
    %23 = vector.load %arg4[%c0_9, %c0_10] : memref<16x128xf32, #tpu.memory_space<vmem>>, vector<16x128xf32>
    tpu.vector_store %arg4[%c0_9, %c0_10], %22 {strides = array<i32>} : memref<16x128xf32, #tpu.memory_space<vmem>>, vector<16x128xf32>,
    return
  }
  func.func @transform_0(%arg0: i32) -> (i32, i32) {
    %c0_i32 = arith.constant 0 : i32
    %c0_i32_0 = arith.constant 0 : i32
    return %arg0, %c0_i32 : i32, i32
  }
  func.func @transform_1(%arg0: i32) -> (i32, i32) {
    %c0_i32 = arith.constant 0 : i32
    %c0_i32_0 = arith.constant 0 : i32
    %c0_i32_1 = arith.constant 0 : i32
    return %c0_i32, %c0_i32_0 : i32, i32
  }
  func.func @transform_2(%arg0: i32) -> (i32, i32) {
    %c0_i32 = arith.constant 0 : i32
    %c0_i32_0 = arith.constant 0 : i32
    %c0_i32_1 = arith.constant 0 : i32
    return %c0_i32, %c0_i32_0 : i32, i32
  }
  func.func @transform_3(%arg0: i32) -> (i32, i32) {
    %c0_i32 = arith.constant 0 : i32
    %c0_i32_0 = arith.constant 0 : i32
    return %arg0, %c0_i32 : i32, i32
  }
}

</mosaic_0001>

<bundles_post_ra>
// kernel: transformer_decoder.19
= control target key start
LH: loop header
LB: loop body
LE: loop exit
PB: predicated region body
PF: predicated region fallthrough
CT: control target
= control target key end

     0   :  { %s824_s12 = smov 0   ;;  %s826_s13 = smov 0   ;;  %s926_s0 = inlined_call_operand.vmem [shape: bf16[16,128], index: 0, kind: input, shape index: {}]   ;;  %s927_s1 = inlined_call_operand.vmem [shape: bf16[128,384], index: 1, kind: input, shape index: {}]   ;;  %s928_s2 = inlined_call_operand.vmem [shape: f32[1,384], index: 2, kind: input, shape index: {}]   ;;  %s929_s3 = inlined_call_operand.vmem [shape: bf16[16,384], index: 3, kind: output, shape index: {}]  }
   0x1   :  { %s828_s14 = smov 0   ;;  %s830_s15 = smov 0  }
   0x2   :  { %s832_s16 = smov 0  }
   0x3 LB: > { %s28_s17 = sadd.s32 1, %s796_s15  ;;  %s649_s18 = sadd.s32 4294967295, %s800_s16   ;;  %s800_s16 = sphi %s832_s16, %s13_s16   ;;  %s796_s15 = sphi %s830_s15, %s934_s15   ;;  %s792_s14 = sphi %s828_s14, %s933_s14   ;;  %s788_s13 = sphi %s826_s13, %s932_s13   ;;  %s784_s12 = sphi %s824_s12, %s931_s12  }
   0x4   : > { %p30_p0 = scmp.ge.s32.totalorder %s28_s17, 3  ;;  %p76_p1 = scmp.ne.s32.totalorder %s788_s13, %s784_s12 }
   0x5   : > { %p77_p2 = scmp.eq.s32.totalorder %s800_s16, 0  ;;  %p134_p4 = scmp.eq.s32.totalorder %s649_s18, 2 }
   0x6   : > { %s936_s17 = smov (%p30_p0, %s28_s17), 0  ;;  %s69_s20 = sadd.s32 1, %s788_s13 }
   0x7   : > { %p78_p3 = por %p77_p2, %p76_p1  ;;  %s65_s19 = ssub.s32 %s796_s15, %s936_s17 }
   0x8   : > { %p67_p5 = scmp.eq.s32.totalorder %s65_s19, 0  ;;  %p859_p6 = por %p134_p4, %p76_p1 }
   0x9   : > { %p653_p7 = scmp.ge.s32.totalorder %s800_s16, 3 }
   0xa   : > { %s864_s22 = scalar_select %p67_p5, %s788_s13, %s69_s20  }
   0xb   : > { %168 = sbr.rel (%p653_p7) target bundleno = 30 (0x1e), region = 20 }
  0x10   : > { %171 = sbr.rel (!%p78_p3) target bundleno = 30 (0x1e), region = 24  ;;  %s173_s23 = sand.u32 (%p78_p3), 1, %s788_s13  }
  0x11   : > { %s655_s24 = sshll.u32 (%p78_p3), %s796_s15, 2  ;;  %s654_s25 = sshll.u32 (%p78_p3), %s173_s23, 6 }
  0x12   : > { %s872_s28 = scalar_lea.vmem (%p78_p3), %s927_s1, %s655_s24  ;;  %s175_s29 = scalar_lea.vmem (%p78_p3), [#allocation3], %s654_s25 }
  0x13   : > { %v197_v0 = vld [vmem:[%s872_s28] sm:$0xf] (%p78_p3)  ;;  %v199_v1 = vld [vmem:[%s872_s28 + $0xc] sm:$0xf] (%p78_p3)  ;;  %v201_v2 = vld [vmem:[%s872_s28 + $0x18] sm:$0xf] (%p78_p3) }
  0x14   : > { %198 = vst [vmem:[%s175_s29] sm:$0xf] (%p78_p3), %v197_v0  ;;  %200 = vst [vmem:[%s175_s29 + $0x4] sm:$0xf] (%p78_p3), %v199_v1  ;;  %v203_v3 = vld [vmem:[%s872_s28 + $0x24] sm:$0xf] (%p78_p3) }
  0x15   : > { %v205_v4 = vld [vmem:[%s872_s28 + $0x30] sm:$0xf]  ;;  %202 = vst [vmem:[%s175_s29 + $0x8] sm:$0xf] %v201_v2  ;;  %204 = vst [vmem:[%s175_s29 + $0xc] sm:$0xf] %v203_v3 }
  0x16   : > { %206 = vst [vmem:[%s175_s29 + $0x10] sm:$0xf] %v205_v4  ;;  %v207_v5 = vld [vmem:[%s872_s28 + $0x3c] sm:$0xf]  ;;  %v209_v6 = vld [vmem:[%s872_s28 + $0x48] sm:$0xf] }
  0x17   : > { %v211_v7 = vld [vmem:[%s872_s28 + $0x54] sm:$0xf]  ;;  %208 = vst [vmem:[%s175_s29 + $0x14] sm:$0xf] %v207_v5  ;;  %210 = vst [vmem:[%s175_s29 + $0x18] sm:$0xf] %v209_v6 }
  0x18   : > { %212 = vst [vmem:[%s175_s29 + $0x1c] sm:$0xf] %v211_v7  ;;  %v213_v8 = vld [vmem:[%s872_s28 + $0x60] sm:$0xf]  ;;  %v215_v9 = vld [vmem:[%s872_s28 + $0x6c] sm:$0xf] }
  0x19   : > { %v217_v10 = vld [vmem:[%s872_s28 + $0x78] sm:$0xf]  ;;  %214 = vst [vmem:[%s175_s29 + $0x20] sm:$0xf] %v213_v8  ;;  %216 = vst [vmem:[%s175_s29 + $0x24] sm:$0xf] %v215_v9 }
  0x1a   : > { %218 = vst [vmem:[%s175_s29 + $0x28] sm:$0xf] %v217_v10  ;;  %v219_v11 = vld [vmem:[%s872_s28 + $0x84] sm:$0xf]  ;;  %v221_v12 = vld [vmem:[%s872_s28 + $0x90] sm:$0xf] }
  0x1b   : > { %v223_v13 = vld [vmem:[%s872_s28 + $0x9c] sm:$0xf]  ;;  %220 = vst [vmem:[%s175_s29 + $0x2c] sm:$0xf] %v219_v11  ;;  %222 = vst [vmem:[%s175_s29 + $0x30] sm:$0xf] %v221_v12 }
  0x1c   : > { %224 = vst [vmem:[%s175_s29 + $0x34] sm:$0xf] %v223_v13  ;;  %v225_v14 = vld [vmem:[%s872_s28 + $0xa8] sm:$0xf]  ;;  %v227_v15 = vld [vmem:[%s872_s28 + $0xb4] sm:$0xf] }
  0x1d   : > { %226 = vst [vmem:[%s175_s29 + $0x38] sm:$0xf] %v225_v14  ;;  %228 = vst [vmem:[%s175_s29 + $0x3c] sm:$0xf] %v227_v15 }
  0x1e PF: > { %p656_p8 = scmp.ge.s32.totalorder %s800_s16, 1  ;;  %p289_p9 = scmp.lt.s32.totalorder %s800_s16, 4 }
  0x20   : > { %p290_p10 = pnand %p656_p8, %p289_p9 }
  0x21   : > { %s296_s30 = sand.u32 (!%p290_p10), 1, %s784_s12   ;;  %p339_p11 = scmp.lt.s32.totalorder (!%p290_p10), %s792_s14, 2 }
  0x22   : > { %293 = sbr.rel (%p290_p10) target bundleno = 282 (0x11a), region = 69  ;;  %s657_s4 = sshll.u32 (!%p290_p10), %s296_s30, 6 }
  0x23   : > { %s298_s5 = scalar_lea.vmem (!%p290_p10), [#allocation3], %s657_s4  ;;  %s658_s18 = sshll.u32 (!%p290_p10), %s296_s30, 3 }
  0x24   : > { %s328_s19 = scalar_lea.vmem (!%p290_p10), [#allocation4], %s658_s18 }
  0x27   : > { %v802_v16 = vmov 0.0   ;;  %vm803_vm0 = vmmov 0   ;;  %v753_v17 = vld [vmem:[%s298_s5 + $0x38] sm:$0xff]   ;;  %v754_v18 = vld [vmem:[%s298_s5 + $0x30] sm:$0xff]   ;;  %v755_v19 = vld [vmem:[%s298_s5 + $0x28] sm:$0xff]   ;;  %s340_s8 = scalar_select %p339_p11, %s792_s14, 2 }
  0x28   : > { %691 = vmatprep.subr.bf16.mxu0 %v802_v16  ;;  %707 = vmatprep.mubr.msk.bf16.mxu0 %vm803_vm0, %v802_v16  ;;  %v756_v20 = vld [vmem:[%s298_s5 + $0x20] sm:$0xff]   ;;  %v757_v21 = vld [vmem:[%s298_s5 + $0x18] sm:$0xff]   ;;  %v758_v22 = vld [vmem:[%s298_s5 + $0x10] sm:$0xff]   ;;  %s672_s20 = sshll.u32 (%p859_p6), %s792_s14, 2 }
  0x29   : > { %692 = vmatpush3.bf16.msra.mxu0 %v753_v17  ;;  %v759_v23 = vld [vmem:[%s298_s5 + $0x8] sm:$0xff]   ;;  %v760_v24 = vld [vmem:[%s298_s5] sm:$0xff]   ;;  %s341_s11 = scalar_lea.vmem %s928_s2, %s340_s8  ;;  %s504_s25 = scalar_lea.vmem (%p859_p6), %s929_s3, %s672_s20 }
  0x2a   : > { %693 = vmatprep.subr.bf16.mxu0 %v802_v16  ;;  %v761_v25 = vld [vmem:[%s926_s0] sm:$0xff]  }
  0x2b   : > { %v668_v27 = vld [vmem:[%s341_s11] ss:$0 sm:$0xff] }
  0x2d   : > { %694 = vmatpush3.bf16.msra.mxu0 %v754_v18 }
  0x2e   : > { %695 = vmatprep.subr.bf16.mxu0 %v802_v16 }
  0x31   : > { %696 = vmatpush3.bf16.msra.mxu0 %v755_v19 }
  0x32   : > { %697 = vmatprep.subr.bf16.mxu0 %v802_v16 }
  0x35   : > { %698 = vmatpush3.bf16.msra.mxu0 %v756_v20 }
  0x36   : > { %699 = vmatprep.subr.bf16.mxu0 %v802_v16 }
  0x39   : > { %700 = vmatpush3.bf16.msra.mxu0 %v757_v21 }
  0x3a   : > { %701 = vmatprep.subr.bf16.mxu0 %v802_v16 }
  0x3d   : > { %702 = vmatpush3.bf16.msra.mxu0 %v758_v22 }
  0x3e   : > { %703 = vmatprep.subr.bf16.mxu0 %v802_v16 }
  0x41   : > { %704 = vmatpush3.bf16.msra.mxu0 %v759_v23 }
  0x42   : > { %705 = vmatprep.subr.bf16.mxu0 %v802_v16 }
  0x45   : > { %706 = vmatpush3.bf16.msra.mxu0 %v760_v24 }
  0x48   : > { %708 = vmatmul.mubr.bf16.vlgmr.msra.gmra.mxu0 %v761_v25 }
 0x108   : > { %v458_v26 = vpop.f32.mrf.mxu0 }
 0x109   : > { %v481_v30 = vadd.f32 %v668_v27, %v458_v26 }
 0x10a   : > { %v709_v28 = vpop.f32.mrf.mxu0 }
 0x10c   : > { %v461_v29 = vpop.f32.mrf.mxu0 }
 0x10d   : > { %v482_v31 = vadd.f32 %v668_v27, %v461_v29  ;;  %499 = sbr.rel (!%p859_p6) target bundleno = 282 (0x11a), region = 85 }
 0x10e   : > { %v710_v32 = vpop.f32.mrf.mxu0 }
 0x10f   : > { %v680_v33 = vpack.c.bf16 %v482_v31, %v481_v30 }
 0x111   : > { %681 = vst [vmem:[%s328_s19] sm:$0xff] %v680_v33  }
 0x118   : > { %v521_v34 = vld [vmem:[%s328_s19] sm:$0xf]  ;;  %v523_v35 = vld [vmem:[%s328_s19 + $0x4] sm:$0xf] }
 0x119   : > { %522 = vst [vmem:[%s504_s25] sm:$0xf] %v521_v34  ;;  %524 = vst [vmem:[%s504_s25 + $0xc] sm:$0xf] %v523_v35 }
 0x11a PF: > { %s13_s16 = sadd.s32 1, %s800_s16   ;;  %s931_s12 = smov %s788_s13 }
 0x11b   : > { %p10_p12 = scmp.ge.s32.totalorder %s13_s16, 5   ;;  %s932_s13 = smov %s864_s22 }
 0x11c   : > { %s933_s14 = smov %s796_s15  ;;  %s934_s15 = smov %s936_s17 }
 0x11d   :  { %12 = sbr.rel (!%p10_p12) target bundleno = 3 (0x3), region = 163 }

// kernel: transformer_decoder.21
= control target key start
LH: loop header
LB: loop body
LE: loop exit
PB: predicated region body
PF: predicated region fallthrough
CT: control target
= control target key end

     0   :  { %v270_v0 = vmov 0.0   ;;  %vm271_vm0 = vmmov 0   ;;  %s355_s1 = inlined_call_operand.vmem [shape: bf16[128,128], index: 1, kind: input, shape index: {}]   ;;  %s356_s0 = inlined_call_operand.vmem [shape: bf16[16,128], index: 0, kind: input, shape index: {}]   ;;  %s357_s2 = inlined_call_operand.vmem [shape: f32[1,128], index: 2, kind: input, shape index: {}]   ;;  %s358_s3 = inlined_call_operand.vmem [shape: f32[16,128], index: 3, kind: input, shape index: {}]   ;;  %s359_s4 = inlined_call_operand.vmem [shape: f32[1,128], index: 4, kind: input, shape index: {}]   ;;  %s360_s5 = inlined_call_operand.vmem [shape: f32[1,128], index: 5, kind: input, shape index: {}]   ;;  %s361_s6 = inlined_call_operand.vmem [shape: f32[16,128], index: 6, kind: output, shape index: {}]  }
   0x1   :  { %235 = vmatprep.subr.bf16.mxu0 %v270_v0  ;;  %v257_v1 = vld [vmem:[%s355_s1 + $0x38] sm:$0xff]   ;;  %251 = vmatprep.mubr.msk.bf16.mxu0 %vm271_vm0, %v270_v0  ;;  %v258_v2 = vld [vmem:[%s355_s1 + $0x30] sm:$0xff]   ;;  %v259_v3 = vld [vmem:[%s355_s1 + $0x28] sm:$0xff]  }
   0x2   :  { %236 = vmatpush3.bf16.msra.mxu0 %v257_v1  ;;  %v260_v4 = vld [vmem:[%s355_s1 + $0x20] sm:$0xff]   ;;  %v261_v5 = vld [vmem:[%s355_s1 + $0x18] sm:$0xff]   ;;  %v262_v6 = vld [vmem:[%s355_s1 + $0x10] sm:$0xff]  }
   0x3   :  { %237 = vmatprep.subr.bf16.mxu0 %v270_v0  ;;  %v263_v7 = vld [vmem:[%s355_s1 + $0x8] sm:$0xff]   ;;  %v264_v8 = vld [vmem:[%s355_s1] sm:$0xff]  }
   0x4   :  { %v265_v9 = vld [vmem:[%s356_s0] sm:$0xff]   ;;  %v164_v18 = vld [vmem:[%s358_s3 + $0x8] sm:$0xff] }
   0x5   :  { %v223_v11 = vld [vmem:[%s357_s2] ss:$0 sm:$0xff] }
   0x6   :  { %238 = vmatpush3.bf16.msra.mxu0 %v258_v2  ;;  %v163_v13 = vld [vmem:[%s358_s3] sm:$0xff] }
   0x7   :  { %239 = vmatprep.subr.bf16.mxu0 %v270_v0  ;;  %v224_v36 = vld [vmem:[%s359_s4] ss:$0 sm:$0xff] }
   0x8   :  { %v225_v38 = vld [vmem:[%s360_s5] ss:$0 sm:$0xff] }
   0xa   :  { %240 = vmatpush3.bf16.msra.mxu0 %v259_v3 }
   0xb   :  { %241 = vmatprep.subr.bf16.mxu0 %v270_v0 }
   0xe   :  { %242 = vmatpush3.bf16.msra.mxu0 %v260_v4 }
   0xf   :  { %243 = vmatprep.subr.bf16.mxu0 %v270_v0 }
  0x12   :  { %244 = vmatpush3.bf16.msra.mxu0 %v261_v5 }
  0x13   :  { %245 = vmatprep.subr.bf16.mxu0 %v270_v0 }
  0x16   :  { %246 = vmatpush3.bf16.msra.mxu0 %v262_v6 }
  0x17   :  { %247 = vmatprep.subr.bf16.mxu0 %v270_v0 }
  0x1a   :  { %248 = vmatpush3.bf16.msra.mxu0 %v263_v7 }
  0x1b   :  { %249 = vmatprep.subr.bf16.mxu0 %v270_v0 }
  0x1e   :  { %250 = vmatpush3.bf16.msra.mxu0 %v264_v8 }
  0x21   :  { %252 = vmatmul.mubr.bf16.vlgmr.msra.gmra.mxu0 %v265_v9 }
  0xe1   :  { %v138_v10 = vpop.f32.mrf.mxu0 }
  0xe2   :  { %v161_v14 = vadd.f32 %v223_v11, %v138_v10 }
  0xe3   :  { %v253_v12 = vpop.f32.mrf.mxu0 }
  0xe4   :  { %v165_v16 = vadd.f32 %v163_v13, %v161_v14 }
  0xe5   :  { %v141_v15 = vpop.f32.mrf.mxu0 }
  0xe6   :  { %167 = vadd.xlane.f32.xlu0 %v165_v16  ;;  %v162_v19 = vadd.f32 %v223_v11, %v141_v15 }
  0xe7   :  { %v254_v17 = vpop.f32.mrf.mxu0 }
  0xe8   :  { %v166_v20 = vadd.f32 %v164_v18, %v162_v19 }
  0xea   :  { %169 = vadd.xlane.f32.xlu0 %v166_v20 }
 0x16f   :  { %v168_v21 = vpop.xlane.xlu0 %167 }
 0x170   :  { %v172_v22 = vmul.f32 0.0078125, %v168_v21 }
 0x172   :  { %v174_v23 = vsub.f32 %v165_v16, %v172_v22 }
 0x173   :  { %v170_v24 = vpop.xlane.xlu0 %169 }
 0x174   :  { %v173_v25 = vmul.f32 0.0078125, %v170_v24  ;;  %v176_v26 = vmul.f32 %v174_v23, %v174_v23 }
 0x176   :  { %v175_v27 = vsub.f32 %v166_v20, %v173_v25  ;;  %178 = vadd.xlane.f32.xlu1 %v176_v26 }
 0x178   :  { %v177_v28 = vmul.f32 %v175_v27, %v175_v27 }
 0x17a   :  { %180 = vadd.xlane.f32.xlu1 %v177_v28 }
 0x1ff   :  { %v179_v29 = vpop.xlane.xlu1 %178 }
 0x200   :  { %v182_v30 = vmul.f32 0.0078125, %v179_v29 }
 0x202   :  { %v184_v31 = vadd.f32 1e-05, %v182_v30 }
 0x203   :  { %v181_v32 = vpop.xlane.xlu1 %180 }
 0x204   :  { %266 = vrsqrt.f32 %v184_v31  ;;  %v183_v33 = vmul.f32 0.0078125, %v181_v32 }
 0x206   :  { %v185_v34 = vadd.f32 1e-05, %v183_v33 }
 0x208   :  { %268 = vrsqrt.f32 %v185_v34 }
 0x211   :  { %v267_v35 = vpop.eup %266 }
 0x212   :  { %v188_v37 = vmul.f32 %v267_v35, %v174_v23 }
 0x214   :  { %v197_v39 = vmul.f32 %v224_v36, %v188_v37 }
 0x215   :  { %v269_v40 = vpop.eup %268 }
 0x216   :  { %v206_v41 = vadd.f32 %v225_v38, %v197_v39  ;;  %v189_v42 = vmul.f32 %v269_v40, %v175_v27 }
 0x218   :  { %208 = vst [vmem:[%s361_s6] sm:$0xff] %v206_v41  ;;  %v198_v43 = vmul.f32 %v224_v36, %v189_v42 }
 0x21a   :  { %v207_v44 = vadd.f32 %v225_v38, %v198_v43 }
 0x21c   :  { %209 = vst [vmem:[%s361_s6 + $0x8] sm:$0xff] %v207_v44 }

// kernel: transformer_decoder.20
= control target key start
LH: loop header
LB: loop body
LE: loop exit
PB: predicated region body
PF: predicated region fallthrough
CT: control target
= control target key end

     0   :  { %s931_s12 = smov 0   ;;  %s1032_s0 = inlined_call_operand.vmem [shape: bf16[2,8,384], index: 0, kind: input, shape index: {}, may-alias: {0,1,2}]   ;;  %s1033_s1 = inlined_call_operand.vmem [shape: bf16[2,8,384], index: 1, kind: input, shape index: {}, may-alias: {0,1,2}]   ;;  %s1034_s2 = inlined_call_operand.vmem [shape: bf16[2,8,384], index: 2, kind: input, shape index: {}, may-alias: {0,1,2}]   ;;  %s1035_s3 = inlined_call_operand.vmem [shape: bf16[2,8,128], index: 3, kind: output, shape index: {}]  }
   0x1 LB: > { %s777_s13 = sadd.s32 4294967295, %s904_s12   ;;  %p781_p0 = scmp.ge.s32.totalorder %s904_s12, 1  ;;  %s904_s12 = sphi %s931_s12, %s13_s12  }
   0x2   : > { %p159_p1 = scmp.lt.s32.totalorder %s904_s12, 3 }
   0x4   : > { %p160_p2 = pnand %p781_p0, %p159_p1 }
   0x5   : > { %p194_p3 = scmp.lt.s32.totalorder (!%p160_p2), %s777_s13, 1  ;;  %s908_s21 = smov (!%p160_p2), 96  }
   0x6   : > { %163 = sbr.rel (%p160_p2) target bundleno = 1415 (0x587), region = 32  ;;  %s909_s22 = smov (!%p160_p2), 64  }
   0x7   : > { %s910_s23 = smov (!%p160_p2), 32  }
   0xb   : > { %v906_v0 = vmov 0.0   ;;  %vm907_vm0 = vmmov 0   ;;  %s1037_s13 = smov (!%p194_p3, %s777_s13), 1  ;;  %vm219_vm1 = vcmask 261120   ;;  %vm267_vm2 = vcmask 64512  }
   0xc   : > { %817 = vmatprep.subr.bf16.mxu0 %v906_v0  ;;  %819 = vmatprep.mubr.msk.bf16.mxu0 %vm907_vm0, %v906_v0  ;;  %s948_s14 = smul.u32 12, %s1037_s13  ;;  %vm283_vm3 = vcmask 1043456   ;;  %vm682_vm4 = vcmask 523264   ;;  %s785_s27 = sshll.u32 %s1037_s13, 2  ;;  %vm684_vm5 = vcmask 785408  }
   0xd   : > { %823 = vmatprep.subr.bf16.mxu1 %v906_v0  ;;  %825 = vmatprep.mubr.msk.bf16.mxu1 %vm907_vm0, %v906_v0  ;;  %s214_s30 = scalar_lea.vmem %s1035_s3, %s785_s27 }
   0xe   : > { %s733_s17 = scalar_lea.vmem %s1033_s1, %s948_s14  ;;  %s198_s20 = scalar_lea.vmem %s1032_s0, %s948_s14 }
   0xf   : > { %v786_v1 = vld [vmem:[%s733_s17 + $0x4] sm:$0xf]  ;;  %v216_v3 = vld [vmem:[%s198_s20] sm:$0xf]  ;;  %s737_s26 = scalar_lea.vmem %s1034_s2, %s948_s14 }
  0x10   : > { %v224_v2 = vsel %vm219_vm1, %v786_v1, 0  ;;  %v791_v10 = vcombine.low %v786_v1, %v786_v1  ;;  %v790_v11 = vcombine.low %v216_v3, %v216_v3  ;;  %v974_v17 = vld [vmem:[%s737_s26 + $0x8] sm:$0xf] }
  0x11   : > { %818 = vmatpush3.bf16.xpose.msra.mxu0 %v224_v2  ;;  %v285_v18 = vsel %vm283_vm3, %v974_v17, 0  ;;  %v793_v1 = vcombine.low %v974_v17, %v974_v17 }
  0x12   : > { %835 = vmatprep.subr.bf16.mxu0 %v906_v0  ;;  %335 = vrot.lane.b32.xlu1 %v791_v10, %s908_s21 }
  0x13   : > { %824 = vmatpush3.bf16.msra.mxu1 %v285_v18 }
  0x14   : > { %829 = vmatprep.subr.bf16.mxu1 %v906_v0 }
  0x16   : > { %330 = vrot.lane.b32.xlu1 %v790_v11, %s908_s21 }
  0x18   : > { %820 = vmatmul.mubr.msk.bf16.vlgmr.msra.gmra.mxu0 %vm219_vm1, %v216_v3 }
  0x19   : > { %837 = vmatprep.mubr.msk.bf16.mxu0 %vm907_vm0, %v906_v0 }
  0x1a   : > { %447 = vrot.lane.b32.xlu1 %v790_v11, %s909_s22 }
  0x1e   : > { %560 = vrot.lane.b32.xlu1 %v791_v10, %s910_s23 }
  0x22   : > { %558 = vrot.lane.b32.xlu1 %v790_v11, %s910_s23 }
  0x84   : > { %v336_v21 = vpop.permute.xlu1 %335 }
  0x85   : > { %v341_v23 = vsel %vm219_vm1, %v336_v21, 0 }
  0x88   : > { %v331_v25 = vpop.permute.xlu1 %330 }
  0x8c   : > { %v448_v27 = vpop.permute.xlu1 %447 }
  0x90   : > { %v561_v29 = vpop.permute.xlu1 %560 }
  0x91   : > { %v566_v30 = vsel %vm219_vm1, %v561_v29, 0 }
  0x94   : > { %v559_v31 = vpop.permute.xlu1 %558 }
  0xd8   : > { %v260_v4 = vpop.f32.mrf.mxu0 }
  0xd9   : > { %v266_v5 = vmul.f32 0.17677669, %v260_v4 }
  0xda   : > { %v821_v6 = vpop.f32.mrf.mxu0 }
  0xdb   : > { %v268_v7 = vsel %vm267_vm2, %v266_v5, -inf }
  0xdc   : > { %269 = vmax.xlane.f32.xlu0 %v268_v7  ;;  %v263_v8 = vpop.f32.mrf.mxu0 }
  0xde   : > { %v822_v9 = vpop.f32.mrf.mxu0 }
 0x165   : > { %v270_v12 = vpop.xlane.xlu0 %269 }
 0x166   : > { %v271_v13 = vsub.f32 %v266_v5, %v270_v12 }
 0x168   : > { %v272_v14 = vmul.f32 1.442695, %v271_v13 }
 0x16a   : > { %882 = vpow2.f32 %v272_v14 }
 0x177   : > { %v883_v15 = vpop.eup %882 }
 0x178   : > { %v274_v16 = vsel %vm267_vm2, %v883_v15, 0.0 }
 0x179   : > { %275 = vadd.xlane.f32.xlu0 %v274_v16 }
 0x18f   : > { %449 = vrot.lane.b32.xlu0 %v791_v10, %s909_s22 }
 0x202   : > { %v276_v19 = vpop.xlane.xlu0 %275 }
 0x203   : > { %884 = vrcp.f32 %v276_v19 }
 0x206   : > { %v450_v26 = vpop.permute.xlu0 %449 }
 0x207   : > { %v455_v28 = vsel %vm219_vm1, %v450_v26, 0 }
 0x210   : > { %v885_v20 = vpop.eup %884 }
 0x211   : > { %v278_v22 = vmul.f32 %v885_v20, %v883_v15 }
 0x213   : > { %v279_v24 = vpack.c.bf16 %v278_v22, %v278_v22 }
 0x215   : > { %826 = vmatmul.mubr.msk.bf16.vlgmr.msra.gmra.mxu1 %vm267_vm2, %v279_v24 }
 0x216   : > { %830 = vmatpush3.bf16.xpose.msra.mxu1 %v341_v23  ;;  %831 = vmatprep.mubr.msk.bf16.mxu1 %vm907_vm0, %v906_v0 }
 0x217   : > { %841 = vmatprep.subr.bf16.mxu1 %v906_v0 }
 0x21d   : > { %832 = vmatmul.mubr.msk.bf16.vlgmr.msra.gmra.mxu1 %vm219_vm1, %v331_v25 }
 0x21e   : > { %842 = vmatpush3.bf16.xpose.msra.mxu1 %v455_v28  ;;  %843 = vmatprep.mubr.msk.bf16.mxu1 %vm907_vm0, %v906_v0 }
 0x21f   : > { %853 = vmatprep.subr.bf16.mxu1 %v906_v0 }
 0x225   : > { %844 = vmatmul.mubr.msk.bf16.vlgmr.msra.gmra.mxu1 %vm219_vm1, %v448_v27 }
 0x226   : > { %854 = vmatpush3.bf16.xpose.msra.mxu1 %v566_v30  ;;  %855 = vmatprep.mubr.msk.bf16.mxu1 %vm907_vm0, %v906_v0 }
 0x22d   : > { %856 = vmatmul.mubr.msk.bf16.vlgmr.msra.gmra.mxu1 %vm219_vm1, %v559_v31 }
 0x2d5   : > { %v995_v32 = vpop.f32.mrf.mxu1 }
 0x2d7   : > { %v827_v33 = vpop.f32.mrf.mxu1 }
 0x2d9   : > { %v324_v34 = vpop.f32.mrf.mxu1 }
 0x2db   : > { %v828_v35 = vpop.f32.mrf.mxu1 }
 0x2dd   : > { %v377_v36 = vpop.f32.mrf.mxu1 }
 0x2de   : > { %v383_v37 = vmul.f32 0.17677669, %v377_v36 }
 0x2df   : > { %v833_v38 = vpop.f32.mrf.mxu1 }
 0x2e0   : > { %v384_v39 = vsel %vm267_vm2, %v383_v37, -inf }
 0x2e1   : > { %385 = vmax.xlane.f32.xlu1 %v384_v39  ;;  %v380_v40 = vpop.f32.mrf.mxu1 }
 0x2e3   : > { %v834_v41 = vpop.f32.mrf.mxu1 }
 0x2e5   : > { %v491_v42 = vpop.f32.mrf.mxu1 }
 0x2e6   : > { %v497_v43 = vmul.f32 0.17677669, %v491_v42 }
 0x2e7   : > { %v845_v44 = vpop.f32.mrf.mxu1 }
 0x2e8   : > { %v498_v45 = vsel %vm267_vm2, %v497_v43, -inf }
 0x2e9   : > { %499 = vmax.xlane.f32.xlu0 %v498_v45  ;;  %v494_v46 = vpop.f32.mrf.mxu1 }
 0x2eb   : > { %v846_v47 = vpop.f32.mrf.mxu1 }
 0x2ed   : > { %v602_v48 = vpop.f32.mrf.mxu1 }
 0x2ee   : > { %v608_v49 = vmul.f32 0.17677669, %v602_v48 }
 0x2ef   : > { %v857_v50 = vpop.f32.mrf.mxu1 }
 0x2f0   : > { %v609_v51 = vsel %vm267_vm2, %v608_v49, -inf }
 0x2f1   : > { %610 = vmax.xlane.f32.xlu1 %v609_v51  ;;  %v605_v52 = vpop.f32.mrf.mxu1 }
 0x2f3   : > { %v858_v53 = vpop.f32.mrf.mxu1 }
 0x36a   : > { %v386_v54 = vpop.xlane.xlu1 %385 }
 0x36b   : > { %v387_v55 = vsub.f32 %v383_v37, %v386_v54 }
 0x36d   : > { %v388_v56 = vmul.f32 1.442695, %v387_v55 }
 0x36f   : > { %886 = vpow2.f32 %v388_v56 }
 0x372   : > { %v500_v57 = vpop.xlane.xlu0 %499 }
 0x373   : > { %v501_v58 = vsub.f32 %v497_v43, %v500_v57 }
 0x375   : > { %v502_v59 = vmul.f32 1.442695, %v501_v58 }
 0x377   : > { %888 = vpow2.f32 %v502_v59 }
 0x37a   : > { %v611_v2 = vpop.xlane.xlu1 %610 }
 0x37b   : > { %v612_v3 = vsub.f32 %v608_v49, %v611_v2 }
 0x37c   : > { %v887_v60 = vpop.eup %886 }
 0x37d   : > { %v390_v61 = vsel %vm267_vm2, %v887_v60, 0.0  ;;  %v613_v4 = vmul.f32 1.442695, %v612_v3 }
 0x37e   : > { %391 = vadd.xlane.f32.xlu1 %v390_v61 }
 0x37f   : > { %890 = vpow2.f32 %v613_v4 }
 0x384   : > { %v889_v62 = vpop.eup %888 }
 0x385   : > { %v504_v63 = vsel %vm267_vm2, %v889_v62, 0.0 }
 0x386   : > { %505 = vadd.xlane.f32.xlu0 %v504_v63 }
 0x38c   : > { %v891_v5 = vpop.eup %890 }
 0x38d   : > { %v615_v6 = vsel %vm267_vm2, %v891_v5, 0.0 }
 0x38f   : > { %510 = vrot.lane.b32.xlu1 %v793_v1, %s909_s22 }
 0x39c   : > { %399 = vrot.lane.b32.xlu0 %v793_v1, %s908_s21 }
 0x3b3   : > { %616 = vadd.xlane.f32.xlu1 %v615_v6 }
 0x3c4   : > { %621 = vrot.lane.b32.xlu1 %v793_v1, %s910_s23 }
 0x407   : > { %v392_v7 = vpop.xlane.xlu1 %391 }
 0x408   : > { %892 = vrcp.f32 %v392_v7 }
 0x40b   : > { %v511_v13 = vpop.permute.xlu1 %510 }
 0x40c   : > { %v516_v15 = vsel %vm283_vm3, %v511_v13, 0 }
 0x40f   : > { %v506_v8 = vpop.xlane.xlu0 %505 }
 0x410   : > { %894 = vrcp.f32 %v506_v8 }
 0x413   : > { %v400_v9 = vpop.permute.xlu0 %399 }
 0x414   : > { %v405_v10 = vsel %vm283_vm3, %v400_v9, 0 }
 0x415   : > { %v893_v11 = vpop.eup %892  ;;  %836 = vmatpush3.bf16.msra.mxu0 %v405_v10 }
 0x416   : > { %847 = vmatprep.subr.bf16.mxu0 %v906_v0  ;;  %v394_v12 = vmul.f32 %v893_v11, %v887_v60 }
 0x418   : > { %v395_v14 = vpack.c.bf16 %v394_v12, %v394_v12 }
 0x41a   : > { %838 = vmatmul.mubr.msk.bf16.vlgmr.msra.gmra.mxu0 %vm267_vm2, %v395_v14 }
 0x41b   : > { %848 = vmatpush3.bf16.msra.mxu0 %v516_v15  ;;  %849 = vmatprep.mubr.msk.bf16.mxu0 %vm907_vm0, %v906_v0 }
 0x41c   : > { %859 = vmatprep.subr.bf16.mxu0 %v906_v0 }
 0x41d   : > { %v895_v16 = vpop.eup %894 }
 0x41e   : > { %v508_v17 = vmul.f32 %v895_v16, %v889_v62 }
 0x420   : > { %v509_v18 = vpack.c.bf16 %v508_v17, %v508_v17 }
 0x422   : > { %850 = vmatmul.mubr.msk.bf16.vlgmr.msra.gmra.mxu0 %vm267_vm2, %v509_v18 }
 0x423   : > { %861 = vmatprep.mubr.msk.bf16.mxu0 %vm907_vm0, %v906_v0 }
 0x43c   : > { %v617_v19 = vpop.xlane.xlu1 %616 }
 0x43d   : > { %896 = vrcp.f32 %v617_v19 }
 0x440   : > { %v622_v20 = vpop.permute.xlu1 %621 }
 0x441   : > { %v627_v21 = vsel %vm283_vm3, %v622_v20, 0 }
 0x442   : > { %860 = vmatpush3.bf16.msra.mxu0 %v627_v21 }
 0x44a   : > { %v897_v22 = vpop.eup %896 }
 0x44b   : > { %v619_v23 = vmul.f32 %v897_v22, %v891_v5 }
 0x44d   : > { %v620_v24 = vpack.c.bf16 %v619_v23, %v619_v23 }
 0x44f   : > { %862 = vmatmul.mubr.msk.bf16.vlgmr.msra.gmra.mxu0 %vm267_vm2, %v620_v24 }
 0x4da   : > { %v441_v25 = vpop.f32.mrf.mxu0 }
 0x4db   : > { %670 = vrot.lane.b32.xlu0 %v441_v25, %s910_s23 }
 0x4dc   : > { %v839_v26 = vpop.f32.mrf.mxu0 }
 0x4de   : > { %v444_v27 = vpop.f32.mrf.mxu0 }
 0x4e0   : > { %v840_v28 = vpop.f32.mrf.mxu0 }
 0x4e2   : > { %v552_v29 = vpop.f32.mrf.mxu0 }
 0x4e3   : > { %674 = vrot.lane.b32.xlu1 %v552_v29, %s909_s22 }
 0x4e4   : > { %v851_v0 = vpop.f32.mrf.mxu0 }
 0x4e6   : > { %v555_v30 = vpop.f32.mrf.mxu0 }
 0x4e8   : > { %v852_v31 = vpop.f32.mrf.mxu0 }
 0x50f   : > { %v663_v33 = vpop.f32.mrf.mxu0 }
 0x510   : > { %678 = vrot.lane.b32.xlu0 %v663_v33, %s908_s21 }
 0x511   : > { %v863_v34 = vpop.f32.mrf.mxu0 }
 0x513   : > { %v666_v35 = vpop.f32.mrf.mxu0 }
 0x515   : > { %v864_v36 = vpop.f32.mrf.mxu0 }
 0x54d   : > { %v671_v37 = vpop.permute.xlu0 %670 }
 0x54e   : > { %v681_v39 = vsel %vm219_vm1, %v995_v32, %v671_v37 }
 0x555   : > { %v675_v38 = vpop.permute.xlu1 %674 }
 0x556   : > { %v683_v40 = vsel %vm682_vm4, %v681_v39, %v675_v38 }
 0x582   : > { %v679_v41 = vpop.permute.xlu0 %678 }
 0x583   : > { %v685_v42 = vsel %vm684_vm5, %v683_v40, %v679_v41 }
 0x584   : > { %v686_v43 = vpack.c.bf16 %v685_v42, %v685_v42 }
 0x586   : > { %687 = vst [vmem:[%s214_s30] sm:$0xf] %v686_v43 }
 0x587 PF: > { %s13_s12 = sadd.s32 1, %s904_s12  }
 0x588   : > { %p10_p4 = scmp.ge.s32.totalorder %s13_s12, 4  }
 0x58a   :  { %12 = sbr.rel (!%p10_p4) target bundleno = 1 (0x1), region = 68 }

// kernel: transformer_decoder.22
= control target key start
LH: loop header
LB: loop body
LE: loop exit
PB: predicated region body
PF: predicated region fallthrough
CT: control target
= control target key end

     0   :  { %v227_v0 = vmov 0.0   ;;  %vm228_vm0 = vmmov 0   ;;  %s282_s1 = inlined_call_operand.vmem [shape: bf16[128,128], index: 1, kind: input, shape index: {}]   ;;  %s283_s0 = inlined_call_operand.vmem [shape: bf16[16,128], index: 0, kind: input, shape index: {}]   ;;  %s284_s2 = inlined_call_operand.vmem [shape: f32[1,128], index: 2, kind: input, shape index: {}]   ;;  %s285_s3 = inlined_call_operand.vmem [shape: bf16[16,128], index: 3, kind: output, shape index: {}]  }
   0x1   :  { %196 = vmatprep.subr.bf16.mxu0 %v227_v0  ;;  %v218_v1 = vld [vmem:[%s282_s1 + $0x38] sm:$0xff]   ;;  %212 = vmatprep.mubr.msk.bf16.mxu0 %vm228_vm0, %v227_v0  ;;  %v219_v2 = vld [vmem:[%s282_s1 + $0x30] sm:$0xff]   ;;  %v220_v3 = vld [vmem:[%s282_s1 + $0x28] sm:$0xff]  }
   0x2   :  { %197 = vmatpush3.bf16.msra.mxu0 %v218_v1  ;;  %v221_v4 = vld [vmem:[%s282_s1 + $0x20] sm:$0xff]   ;;  %v222_v5 = vld [vmem:[%s282_s1 + $0x18] sm:$0xff]   ;;  %v223_v6 = vld [vmem:[%s282_s1 + $0x10] sm:$0xff]  }
   0x3   :  { %198 = vmatprep.subr.bf16.mxu0 %v227_v0  ;;  %v224_v7 = vld [vmem:[%s282_s1 + $0x8] sm:$0xff]   ;;  %v225_v8 = vld [vmem:[%s282_s1] sm:$0xff]  }
   0x4   :  { %v226_v9 = vld [vmem:[%s283_s0] sm:$0xff]  }
   0x5   :  { %v177_v11 = vld [vmem:[%s284_s2] ss:$0 sm:$0xff] }
   0x6   :  { %199 = vmatpush3.bf16.msra.mxu0 %v219_v2 }
   0x7   :  { %200 = vmatprep.subr.bf16.mxu0 %v227_v0 }
   0xa   :  { %201 = vmatpush3.bf16.msra.mxu0 %v220_v3 }
   0xb   :  { %202 = vmatprep.subr.bf16.mxu0 %v227_v0 }
   0xe   :  { %203 = vmatpush3.bf16.msra.mxu0 %v221_v4 }
   0xf   :  { %204 = vmatprep.subr.bf16.mxu0 %v227_v0 }
  0x12   :  { %205 = vmatpush3.bf16.msra.mxu0 %v222_v5 }
  0x13   :  { %206 = vmatprep.subr.bf16.mxu0 %v227_v0 }
  0x16   :  { %207 = vmatpush3.bf16.msra.mxu0 %v223_v6 }
  0x17   :  { %208 = vmatprep.subr.bf16.mxu0 %v227_v0 }
  0x1a   :  { %209 = vmatpush3.bf16.msra.mxu0 %v224_v7 }
  0x1b   :  { %210 = vmatprep.subr.bf16.mxu0 %v227_v0 }
  0x1e   :  { %211 = vmatpush3.bf16.msra.mxu0 %v225_v8 }
  0x21   :  { %213 = vmatmul.mubr.bf16.vlgmr.msra.gmra.mxu0 %v226_v9 }
  0xe1   :  { %v129_v10 = vpop.f32.mrf.mxu0 }
  0xe2   :  { %v152_v14 = vadd.f32 %v177_v11, %v129_v10 }
  0xe3   :  { %v214_v12 = vpop.f32.mrf.mxu0 }
  0xe5   :  { %v132_v13 = vpop.f32.mrf.mxu0 }
  0xe6   :  { %v153_v15 = vadd.f32 %v177_v11, %v132_v13 }
  0xe7   :  { %v215_v16 = vpop.f32.mrf.mxu0 }
  0xe8   :  { %v185_v17 = vpack.c.bf16 %v153_v15, %v152_v14 }
  0xea   :  { %186 = vst [vmem:[%s285_s3] sm:$0xff] %v185_v17  }

// kernel: transformer_decoder.24
= control target key start
LH: loop header
LB: loop body
LE: loop exit
PB: predicated region body
PF: predicated region fallthrough
CT: control target
= control target key end

     0   :  { %s1057_s12 = smov 0   ;;  %s1059_s13 = smov 0   ;;  %s1204_s0 = inlined_call_operand.vmem [shape: bf16[2,8,128], index: 0, kind: input, shape index: {}]   ;;  %s1205_s1 = inlined_call_operand.vmem [shape: bf16[2,16,256], index: 1, kind: input, shape index: {}, may-alias: {1,2}]   ;;  %s1206_s2 = inlined_call_operand.vmem [shape: bf16[2,16,256], index: 2, kind: input, shape index: {}, may-alias: {1,2}]   ;;  %s1207_s3 = inlined_call_operand.vmem [shape: bf16[2,8,128], index: 3, kind: output, shape index: {}]  }
   0x1   :  { %s1061_s14 = smov 0  }
   0x2 LB: > { %s864_s15 = sadd.s32 4294967295, %s1030_s14   ;;  %s1074_s16 = sadd.s32 1, %s1030_s14   ;;  %s1030_s14 = sphi %s1061_s14, %s1211_s14   ;;  %s1026_s13 = sphi %s1059_s13, %s1210_s13   ;;  %s1022_s12 = sphi %s1057_s12, %s1209_s12  }
   0x3   : > { %s43_s17 = ssub.s32 %s1030_s14, %s1074_s16  ;;  %s46_s18 = sadd.s32 1, %s1026_s13 }
   0x4   : > { %p44_p0 = scmp.eq.s32.totalorder %s43_s17, 0  ;;  %p53_p1 = scmp.ne.s32.totalorder %s1026_s13, %s1022_s12 }
   0x5   : > { %p54_p2 = scmp.eq.s32.totalorder %s1030_s14, 0  ;;  %p867_p4 = scmp.ge.s32.totalorder %s1030_s14, 2 }
   0x6   : > { %s1083_s19 = scalar_select %p44_p0, %s1026_s13, %s46_s18  }
   0x7   : > { %p1085_p3 = por %p54_p2, %p53_p1  ;;  %131 = sbr.rel (%p867_p4) target bundleno = 22 (0x16), region = 16 }
   0xc   : > { %141 = sbr.rel (!%p1085_p3) target bundleno = 17 (0x11), region = 24  ;;  %s143_s21 = sand.u32 (%p1085_p3), 1, %s1026_s13  }
   0xd   : > { %s894_s22 = sshll.u32 (%p1085_p3), %s1030_s14, 4  ;;  %s868_s23 = sshll.u32 (%p1085_p3), %s143_s21, 3 }
   0xe   : > { %s148_s26 = scalar_lea.vmem (%p1085_p3), %s1205_s1, %s894_s22  ;;  %s145_s27 = scalar_lea.vmem (%p1085_p3), [#allocation2], %s868_s23 }
   0xf   : > { %v165_v0 = vld [vmem:[%s148_s26] sm:$0xf] (%p1085_p3)  ;;  %v167_v1 = vld [vmem:[%s148_s26 + $0x8] sm:$0xf] (%p1085_p3) }
  0x10   : > { %166 = vst [vmem:[%s145_s27] sm:$0xf] (%p1085_p3), %v165_v0  ;;  %168 = vst [vmem:[%s145_s27 + $0x4] sm:$0xf] (%p1085_p3), %v167_v1 }
  0x11 PF: > { %196 = sbr.rel (!%p1085_p3) target bundleno = 22 (0x16), region = 65  ;;  %s198_s28 = sand.u32 (%p1085_p3), 1, %s1026_s13  }
  0x12   : > { %s895_s29 = sshll.u32 (%p1085_p3), %s1030_s14, 4  ;;  %s871_s30 = sshll.u32 (%p1085_p3), %s198_s28, 3 }
  0x13   : > { %s802_s6 = scalar_lea.vmem (%p1085_p3), %s1206_s2, %s895_s29  ;;  %s200_s7 = scalar_lea.vmem (%p1085_p3), [#allocation3], %s871_s30 }
  0x14   : > { %v874_v2 = vld [vmem:[%s802_s6 + $0x4] sm:$0xf] (%p1085_p3)  ;;  %v875_v3 = vld [vmem:[%s802_s6 + $0xc] sm:$0xf] (%p1085_p3) }
  0x15   : > { %222 = vst [vmem:[%s200_s7] sm:$0xf] (%p1085_p3), %v874_v2  ;;  %224 = vst [vmem:[%s200_s7 + $0x4] sm:$0xf] (%p1085_p3), %v875_v3 }
  0x16 PF: > { %p876_p5 = scmp.ge.s32.totalorder %s1030_s14, 1  ;;  %p251_p6 = scmp.lt.s32.totalorder %s1030_s14, 3 }
  0x18   : > { %p252_p7 = pnand %p876_p5, %p251_p6 }
  0x19   : > { %s258_s8 = sand.u32 (!%p252_p7), 1, %s1022_s12   ;;  %p295_p8 = scmp.lt.s32.totalorder (!%p252_p7), %s864_s15, 1 }
  0x1a   : > { %255 = sbr.rel (%p252_p7) target bundleno = 1432 (0x598), region = 106  ;;  %s1110_s9 = sshll.u32 (!%p252_p7), %s258_s8, 3 }
  0x1b   : > { %s260_s10 = scalar_lea.vmem (!%p252_p7), [#allocation2], %s1110_s9  ;;  %s1034_s14 = smov (!%p252_p7), 96  }
  0x1c   : > { %s1035_s20 = smov (!%p252_p7), 64   ;;  %s1036_s21 = smov (!%p252_p7), 32  }
  0x1d   : > { %s267_s22 = scalar_lea.vmem (!%p252_p7), [#allocation3], %s1110_s9 }
  0x1f   : > { %v1032_v4 = vmov 0.0   ;;  %vm1033_vm0 = vmmov 0   ;;  %vm314_vm1 = vcmask 261120   ;;  %v989_v5 = vld [vmem:[%s260_s10] sm:$0xff]   ;;  %s1213_s15 = smov (!%p295_p8, %s864_s15), 1  ;;  %vm362_vm2 = vcmask 130048  }
  0x20   : > { %912 = vmatprep.subr.bf16.mxu0 %v1032_v4  ;;  %914 = vmatprep.mubr.msk.bf16.mxu0 %vm1033_vm0, %v1032_v4  ;;  %v319_v6 = vsel %vm314_vm1, %v989_v5, 0  ;;  %s879_s11 = sshll.u32 %s1213_s15, 2  ;;  %v1141_v20 = vld [vmem:[%s267_s22] sm:$0xff]   ;;  %vm767_vm3 = vcmask 523264   ;;  %vm769_vm4 = vcmask 785408  }
  0x21   : > { %918 = vmatprep.subr.bf16.mxu1 %v1032_v4  ;;  %920 = vmatprep.mubr.msk.bf16.mxu1 %vm1033_vm0, %v1032_v4  ;;  %s298_s18 = scalar_lea.vmem %s1204_s0, %s879_s11  ;;  %s302_s25 = scalar_lea.vmem %s1207_s3, %s879_s11 }
  0x22   : > { %913 = vmatpush3.bf16.xpose.msra.mxu0 %v319_v6  ;;  %v304_v7 = vld [vmem:[%s298_s18] sm:$0xf]  ;;  %429 = vrot.lane.b32.xlu1 %v989_v5, %s1034_s14 }
  0x23   : > { %930 = vmatprep.subr.bf16.mxu0 %v1032_v4  ;;  %v885_v14 = vcombine.low %v304_v7, %v304_v7  ;;  %919 = vmatpush3.bf16.msra.mxu1 %v1141_v20 }
  0x24   : > { %924 = vmatprep.subr.bf16.mxu1 %v1032_v4 }
  0x26   : > { %427 = vrot.lane.b32.xlu1 %v885_v14, %s1034_s14 }
  0x29   : > { %915 = vmatmul.mubr.msk.bf16.vlgmr.msra.gmra.mxu0 %vm314_vm1, %v304_v7 }
  0x2a   : > { %932 = vmatprep.mubr.msk.bf16.mxu0 %vm1033_vm0, %v1032_v4  ;;  %536 = vrot.lane.b32.xlu1 %v885_v14, %s1035_s20 }
  0x2e   : > { %647 = vrot.lane.b32.xlu1 %v989_v5, %s1036_s21 }
  0x32   : > { %645 = vrot.lane.b32.xlu1 %v885_v14, %s1036_s21 }
  0x94   : > { %v430_v23 = vpop.permute.xlu1 %429 }
  0x95   : > { %v435_v25 = vsel %vm314_vm1, %v430_v23, 0 }
  0x98   : > { %v428_v27 = vpop.permute.xlu1 %427 }
  0x9c   : > { %v537_v29 = vpop.permute.xlu1 %536 }
  0xa0   : > { %v648_v31 = vpop.permute.xlu1 %647 }
  0xa1   : > { %v653_v32 = vsel %vm314_vm1, %v648_v31, 0 }
  0xa4   : > { %v646_v33 = vpop.permute.xlu1 %645 }
  0xe9   : > { %v355_v8 = vpop.f32.mrf.mxu0 }
  0xea   : > { %v361_v9 = vmul.f32 0.17677669, %v355_v8 }
  0xeb   : > { %v916_v10 = vpop.f32.mrf.mxu0 }
  0xec   : > { %v363_v11 = vsel %vm362_vm2, %v361_v9, -inf }
  0xed   : > { %364 = vmax.xlane.f32.xlu0 %v363_v11  ;;  %v358_v12 = vpop.f32.mrf.mxu0 }
  0xef   : > { %v917_v13 = vpop.f32.mrf.mxu0 }
 0x176   : > { %v365_v15 = vpop.xlane.xlu0 %364 }
 0x177   : > { %v366_v16 = vsub.f32 %v361_v9, %v365_v15 }
 0x179   : > { %v367_v17 = vmul.f32 1.442695, %v366_v16 }
 0x17b   : > { %992 = vpow2.f32 %v367_v17 }
 0x188   : > { %v993_v18 = vpop.eup %992 }
 0x189   : > { %v369_v19 = vsel %vm362_vm2, %v993_v18, 0.0 }
 0x18a   : > { %370 = vadd.xlane.f32.xlu0 %v369_v19 }
 0x1a0   : > { %538 = vrot.lane.b32.xlu0 %v989_v5, %s1035_s20 }
 0x213   : > { %v371_v21 = vpop.xlane.xlu0 %370 }
 0x214   : > { %994 = vrcp.f32 %v371_v21 }
 0x217   : > { %v539_v28 = vpop.permute.xlu0 %538 }
 0x218   : > { %v544_v30 = vsel %vm314_vm1, %v539_v28, 0 }
 0x221   : > { %v995_v22 = vpop.eup %994 }
 0x222   : > { %v373_v24 = vmul.f32 %v995_v22, %v993_v18 }
 0x224   : > { %v374_v26 = vpack.c.bf16 %v373_v24, %v373_v24 }
 0x226   : > { %921 = vmatmul.mubr.msk.bf16.vlgmr.msra.gmra.mxu1 %vm362_vm2, %v374_v26 }
 0x227   : > { %925 = vmatpush3.bf16.xpose.msra.mxu1 %v435_v25  ;;  %926 = vmatprep.mubr.msk.bf16.mxu1 %vm1033_vm0, %v1032_v4 }
 0x228   : > { %936 = vmatprep.subr.bf16.mxu1 %v1032_v4 }
 0x22e   : > { %927 = vmatmul.mubr.msk.bf16.vlgmr.msra.gmra.mxu1 %vm314_vm1, %v428_v27 }
 0x22f   : > { %937 = vmatpush3.bf16.xpose.msra.mxu1 %v544_v30  ;;  %938 = vmatprep.mubr.msk.bf16.mxu1 %vm1033_vm0, %v1032_v4 }
 0x230   : > { %948 = vmatprep.subr.bf16.mxu1 %v1032_v4 }
 0x236   : > { %939 = vmatmul.mubr.msk.bf16.vlgmr.msra.gmra.mxu1 %vm314_vm1, %v537_v29 }
 0x237   : > { %949 = vmatpush3.bf16.xpose.msra.mxu1 %v653_v32  ;;  %950 = vmatprep.mubr.msk.bf16.mxu1 %vm1033_vm0, %v1032_v4 }
 0x23e   : > { %951 = vmatmul.mubr.msk.bf16.vlgmr.msra.gmra.mxu1 %vm314_vm1, %v646_v33 }
 0x2e6   : > { %v1161_v34 = vpop.f32.mrf.mxu1 }
 0x2e8   : > { %v922_v35 = vpop.f32.mrf.mxu1 }
 0x2ea   : > { %v421_v36 = vpop.f32.mrf.mxu1 }
 0x2ec   : > { %v923_v37 = vpop.f32.mrf.mxu1 }
 0x2ee   : > { %v471_v38 = vpop.f32.mrf.mxu1 }
 0x2ef   : > { %v477_v39 = vmul.f32 0.17677669, %v471_v38 }
 0x2f0   : > { %v928_v40 = vpop.f32.mrf.mxu1 }
 0x2f1   : > { %v478_v41 = vsel %vm362_vm2, %v477_v39, -inf }
 0x2f2   : > { %479 = vmax.xlane.f32.xlu1 %v478_v41  ;;  %v474_v42 = vpop.f32.mrf.mxu1 }
 0x2f4   : > { %v929_v43 = vpop.f32.mrf.mxu1 }
 0x2f6   : > { %v580_v44 = vpop.f32.mrf.mxu1 }
 0x2f7   : > { %v586_v45 = vmul.f32 0.17677669, %v580_v44 }
 0x2f8   : > { %v940_v46 = vpop.f32.mrf.mxu1 }
 0x2f9   : > { %v587_v47 = vsel %vm362_vm2, %v586_v45, -inf }
 0x2fa   : > { %588 = vmax.xlane.f32.xlu0 %v587_v47  ;;  %v583_v48 = vpop.f32.mrf.mxu1 }
 0x2fc   : > { %v941_v49 = vpop.f32.mrf.mxu1 }
 0x2fe   : > { %v689_v50 = vpop.f32.mrf.mxu1 }
 0x2ff   : > { %v695_v51 = vmul.f32 0.17677669, %v689_v50 }
 0x300   : > { %v952_v52 = vpop.f32.mrf.mxu1 }
 0x301   : > { %v696_v53 = vsel %vm362_vm2, %v695_v51, -inf }
 0x302   : > { %697 = vmax.xlane.f32.xlu1 %v696_v53  ;;  %v692_v54 = vpop.f32.mrf.mxu1 }
 0x304   : > { %v953_v55 = vpop.f32.mrf.mxu1 }
 0x37b   : > { %v480_v56 = vpop.xlane.xlu1 %479 }
 0x37c   : > { %v481_v57 = vsub.f32 %v477_v39, %v480_v56 }
 0x37e   : > { %v482_v58 = vmul.f32 1.442695, %v481_v57 }
 0x380   : > { %996 = vpow2.f32 %v482_v58 }
 0x383   : > { %v589_v59 = vpop.xlane.xlu0 %588 }
 0x384   : > { %v590_v60 = vsub.f32 %v586_v45, %v589_v59 }
 0x386   : > { %v591_v61 = vmul.f32 1.442695, %v590_v60 }
 0x388   : > { %998 = vpow2.f32 %v591_v61 }
 0x38b   : > { %v698_v2 = vpop.xlane.xlu1 %697 }
 0x38c   : > { %v699_v3 = vsub.f32 %v695_v51, %v698_v2 }
 0x38d   : > { %v997_v62 = vpop.eup %996 }
 0x38e   : > { %v484_v63 = vsel %vm362_vm2, %v997_v62, 0.0  ;;  %v700_v5 = vmul.f32 1.442695, %v699_v3 }
 0x38f   : > { %485 = vadd.xlane.f32.xlu1 %v484_v63 }
 0x390   : > { %1000 = vpow2.f32 %v700_v5 }
 0x395   : > { %v999_v0 = vpop.eup %998 }
 0x396   : > { %v593_v1 = vsel %vm362_vm2, %v999_v0, 0.0 }
 0x397   : > { %594 = vadd.xlane.f32.xlu0 %v593_v1 }
 0x39d   : > { %v1001_v6 = vpop.eup %1000 }
 0x39e   : > { %v702_v7 = vsel %vm362_vm2, %v1001_v6, 0.0 }
 0x3a0   : > { %599 = vrot.lane.b32.xlu1 %v1141_v20, %s1035_s20 }
 0x3ad   : > { %490 = vrot.lane.b32.xlu0 %v1141_v20, %s1034_s14 }
 0x3c4   : > { %703 = vadd.xlane.f32.xlu1 %v702_v7 }
 0x3d5   : > { %708 = vrot.lane.b32.xlu1 %v1141_v20, %s1036_s21 }
 0x418   : > { %v486_v8 = vpop.xlane.xlu1 %485 }
 0x419   : > { %1002 = vrcp.f32 %v486_v8 }
 0x41c   : > { %v600_v14 = vpop.permute.xlu1 %599 }
 0x420   : > { %v595_v9 = vpop.xlane.xlu0 %594 }
 0x421   : > { %1004 = vrcp.f32 %v595_v9 }
 0x424   : > { %v491_v10 = vpop.permute.xlu0 %490 }
 0x425   : > { %931 = vmatpush3.bf16.msra.mxu0 %v491_v10 }
 0x426   : > { %v1003_v11 = vpop.eup %1002  ;;  %942 = vmatprep.subr.bf16.mxu0 %v1032_v4 }
 0x427   : > { %v488_v12 = vmul.f32 %v1003_v11, %v997_v62 }
 0x429   : > { %v489_v13 = vpack.c.bf16 %v488_v12, %v488_v12 }
 0x42b   : > { %933 = vmatmul.mubr.msk.bf16.vlgmr.msra.gmra.mxu0 %vm362_vm2, %v489_v13 }
 0x42c   : > { %943 = vmatpush3.bf16.msra.mxu0 %v600_v14  ;;  %944 = vmatprep.mubr.msk.bf16.mxu0 %vm1033_vm0, %v1032_v4 }
 0x42d   : > { %954 = vmatprep.subr.bf16.mxu0 %v1032_v4 }
 0x42e   : > { %v1005_v15 = vpop.eup %1004 }
 0x42f   : > { %v597_v16 = vmul.f32 %v1005_v15, %v999_v0 }
 0x431   : > { %v598_v17 = vpack.c.bf16 %v597_v16, %v597_v16 }
 0x433   : > { %945 = vmatmul.mubr.msk.bf16.vlgmr.msra.gmra.mxu0 %vm362_vm2, %v598_v17 }
 0x434   : > { %956 = vmatprep.mubr.msk.bf16.mxu0 %vm1033_vm0, %v1032_v4 }
 0x44d   : > { %v704_v18 = vpop.xlane.xlu1 %703 }
 0x44e   : > { %1006 = vrcp.f32 %v704_v18 }
 0x451   : > { %v709_v19 = vpop.permute.xlu1 %708 }
 0x452   : > { %955 = vmatpush3.bf16.msra.mxu0 %v709_v19 }
 0x45b   : > { %v1007_v20 = vpop.eup %1006 }
 0x45c   : > { %v706_v21 = vmul.f32 %v1007_v20, %v1001_v6 }
 0x45e   : > { %v707_v22 = vpack.c.bf16 %v706_v21, %v706_v21 }
 0x460   : > { %957 = vmatmul.mubr.msk.bf16.vlgmr.msra.gmra.mxu0 %vm362_vm2, %v707_v22 }
 0x4eb   : > { %v530_v23 = vpop.f32.mrf.mxu0 }
 0x4ec   : > { %755 = vrot.lane.b32.xlu0 %v530_v23, %s1036_s21 }
 0x4ed   : > { %v934_v24 = vpop.f32.mrf.mxu0 }
 0x4ef   : > { %v533_v25 = vpop.f32.mrf.mxu0 }
 0x4f1   : > { %v935_v26 = vpop.f32.mrf.mxu0 }
 0x4f3   : > { %v639_v27 = vpop.f32.mrf.mxu0 }
 0x4f4   : > { %759 = vrot.lane.b32.xlu1 %v639_v27, %s1035_s20 }
 0x4f5   : > { %v946_v4 = vpop.f32.mrf.mxu0 }
 0x4f7   : > { %v642_v28 = vpop.f32.mrf.mxu0 }
 0x4f9   : > { %v947_v29 = vpop.f32.mrf.mxu0 }
 0x520   : > { %v748_v30 = vpop.f32.mrf.mxu0 }
 0x521   : > { %763 = vrot.lane.b32.xlu0 %v748_v30, %s1034_s14 }
 0x522   : > { %v958_v31 = vpop.f32.mrf.mxu0 }
 0x524   : > { %v751_v32 = vpop.f32.mrf.mxu0 }
 0x526   : > { %v959_v33 = vpop.f32.mrf.mxu0 }
 0x55e   : > { %v756_v35 = vpop.permute.xlu0 %755 }
 0x55f   : > { %v766_v37 = vsel %vm314_vm1, %v1161_v34, %v756_v35 }
 0x566   : > { %v760_v36 = vpop.permute.xlu1 %759 }
 0x567   : > { %v768_v38 = vsel %vm767_vm3, %v766_v37, %v760_v36 }
 0x593   : > { %v764_v39 = vpop.permute.xlu0 %763 }
 0x594   : > { %v770_v40 = vsel %vm769_vm4, %v768_v38, %v764_v39 }
 0x595   : > { %v771_v41 = vpack.c.bf16 %v770_v40, %v770_v40 }
 0x597   : > { %772 = vst [vmem:[%s302_s25] sm:$0xf] %v771_v41 }
 0x598 PF: > { %p10_p9 = scmp.ge.s32.totalorder %s1074_s16, 4   ;;  %s1209_s12 = smov %s1026_s13 }
 0x599   : > { %s1210_s13 = smov %s1083_s19  ;;  %s1211_s14 = smov %s1074_s16 }
 0x59a   :  { %12 = sbr.rel (!%p10_p9) target bundleno = 2 (0x2), region = 160 }

// kernel: transformer_decoder.23
= control target key start
LH: loop header
LB: loop body
LE: loop exit
PB: predicated region body
PF: predicated region fallthrough
CT: control target
= control target key end

     0   :  { %v348_v1 = vmov 0   ;;  %v229_v19 = vlaneseq  ;;  %s438_s1 = inlined_call_operand.vmem [shape: bf16[128,256], index: 1, kind: input, shape index: {}]   ;;  %s439_s0 = inlined_call_operand.vmem [shape: bf16[32,128], index: 0, kind: input, shape index: {}]   ;;  %s440_s2 = inlined_call_operand.vmem [shape: f32[1,256], index: 2, kind: input, shape index: {}]   ;;  %s441_s3 = inlined_call_operand.vmem [shape: bf16[32,256], index: 3, kind: output, shape index: {}]  }
   0x1   :  { %v322_v0 = vld [vmem:[%s438_s1 + $0x74] ss:$8 sps:$4 sm:$0xff]   ;;  %179 = vmatprep.mubr.bf16.mxu0 %v348_v1  ;;  %189 = vmatprep.mubr.bf16.mxu1 %v348_v1  ;;  %v324_v2 = vld [vmem:[%s438_s1 + $0x70] ss:$8 sps:$4 sm:$0xff]   ;;  %v325_v3 = vld [vmem:[%s438_s1 + $0x64] ss:$8 sps:$4 sm:$0xff]  }
   0x2   :  { %147 = vmatprep.subr.bf16.mxu0 %v322_v0  ;;  %305 = vmatprep.subr.bf16.mxu1 %v322_v0  ;;  %v327_v4 = vld [vmem:[%s438_s1 + $0x60] ss:$8 sps:$4 sm:$0xff]   ;;  %v328_v5 = vld [vmem:[%s438_s1 + $0x54] ss:$8 sps:$4 sm:$0xff]   ;;  %v330_v6 = vld [vmem:[%s438_s1 + $0x50] ss:$8 sps:$4 sm:$0xff]  }
   0x3   :  { %148 = vmatpush1.bf16.msra.mxu0 %v324_v2  ;;  %313 = vmatpush1.bf16.msra.mxu1 %v324_v2  ;;  %v331_v7 = vld [vmem:[%s438_s1 + $0x44] ss:$8 sps:$4 sm:$0xff]   ;;  %v333_v8 = vld [vmem:[%s438_s1 + $0x40] ss:$8 sps:$4 sm:$0xff]   ;;  %v334_v9 = vld [vmem:[%s438_s1 + $0x34] ss:$8 sps:$4 sm:$0xff]  }
   0x4   :  { %149 = vmatprep.subr.bf16.mxu0 %v325_v3  ;;  %306 = vmatprep.subr.bf16.mxu1 %v325_v3  ;;  %v336_v10 = vld [vmem:[%s438_s1 + $0x30] ss:$8 sps:$4 sm:$0xff]   ;;  %v337_v11 = vld [vmem:[%s438_s1 + $0x24] ss:$8 sps:$4 sm:$0xff]   ;;  %v339_v12 = vld [vmem:[%s438_s1 + $0x20] ss:$8 sps:$4 sm:$0xff]  }
   0x5   :  { %v340_v13 = vld [vmem:[%s438_s1 + $0x14] ss:$8 sps:$4 sm:$0xff]   ;;  %v342_v14 = vld [vmem:[%s438_s1 + $0x10] ss:$8 sps:$4 sm:$0xff]   ;;  %v343_v15 = vld [vmem:[%s438_s1 + $0x4] ss:$8 sps:$4 sm:$0xff]  }
   0x6   :  { %v345_v16 = vld [vmem:[%s438_s1] ss:$8 sps:$4 sm:$0xff]   ;;  %v230_v20 = vshrl.u32 %v229_v19, 7 }
   0x7   :  { %150 = vmatpush1.bf16.msra.mxu0 %v327_v4  ;;  %314 = vmatpush1.bf16.msra.mxu1 %v327_v4  ;;  %v346_v17 = vld [vmem:[%s439_s0] sm:$0xff]   ;;  %v347_v18 = vld [vmem:[%s439_s0 + $0x8] sm:$0xff]  }
   0x8   :  { %151 = vmatprep.subr.bf16.mxu0 %v328_v5  ;;  %307 = vmatprep.subr.bf16.mxu1 %v328_v5  ;;  %v231_v21 = vsub.s32 0, %v230_v20  ;;  %v235_v22 = vsub.s32 1, %v230_v20  ;;  %v227_v23 = vld [vmem:[%s440_s2] sm:$0x3] }
   0xa   :  { %v232_v24 = vrot.slane %v227_v23, %v231_v21  ;;  %v236_v25 = vrot.slane %v227_v23, %v235_v22 }
   0xb   :  { %152 = vmatpush1.bf16.msra.mxu0 %v330_v6  ;;  %315 = vmatpush1.bf16.msra.mxu1 %v330_v6 }
   0xc   :  { %153 = vmatprep.subr.bf16.mxu0 %v331_v7  ;;  %308 = vmatprep.subr.bf16.mxu1 %v331_v7 }
   0xf   :  { %154 = vmatpush1.bf16.msra.mxu0 %v333_v8  ;;  %316 = vmatpush1.bf16.msra.mxu1 %v333_v8 }
  0x10   :  { %155 = vmatprep.subr.bf16.mxu0 %v334_v9  ;;  %309 = vmatprep.subr.bf16.mxu1 %v334_v9 }
  0x13   :  { %156 = vmatpush1.bf16.msra.mxu0 %v336_v10  ;;  %317 = vmatpush1.bf16.msra.mxu1 %v336_v10 }
  0x14   :  { %157 = vmatprep.subr.bf16.mxu0 %v337_v11  ;;  %310 = vmatprep.subr.bf16.mxu1 %v337_v11 }
  0x17   :  { %158 = vmatpush1.bf16.msra.mxu0 %v339_v12  ;;  %318 = vmatpush1.bf16.msra.mxu1 %v339_v12 }
  0x18   :  { %159 = vmatprep.subr.bf16.mxu0 %v340_v13  ;;  %311 = vmatprep.subr.bf16.mxu1 %v340_v13 }
  0x1b   :  { %160 = vmatpush1.bf16.msra.mxu0 %v342_v14  ;;  %319 = vmatpush1.bf16.msra.mxu1 %v342_v14 }
  0x1c   :  { %161 = vmatprep.subr.bf16.mxu0 %v343_v15  ;;  %312 = vmatprep.subr.bf16.mxu1 %v343_v15 }
  0x1f   :  { %162 = vmatpush1.bf16.msra.mxu0 %v345_v16  ;;  %320 = vmatpush1.bf16.msra.mxu1 %v345_v16 }
  0x22   :  { %180 = vmatmul.mubr.bf16.vlgmr.msra.gmra.mxu0 %v346_v17  ;;  %190 = vmatmul.mubr.bf16.vlgmr.msra.gmra.mxu1 %v347_v18 }
  0xe2   :  { %v181_v26 = vpop.f32.mrf.mxu0  ;;  %v191_v27 = vpop.f32.mrf.mxu1 }
  0xe3   :  { %v239_v30 = vadd.f32 %v232_v24, %v181_v26  ;;  %v243_v31 = vadd.f32 %v232_v24, %v191_v27 }
  0xe4   :  { %v183_v28 = vpop.f32.mrf.mxu0  ;;  %v193_v29 = vpop.f32.mrf.mxu1 }
  0xe5   :  { %v240_v32 = vadd.f32 %v236_v25, %v183_v28  ;;  %v244_v33 = vadd.f32 %v236_v25, %v193_v29 }
  0xe6   :  { %v185_v34 = vpop.f32.mrf.mxu0  ;;  %v195_v35 = vpop.f32.mrf.mxu1 }
  0xe7   :  { %v301_v36 = vpack.c.bf16 %v240_v32, %v239_v30  ;;  %v303_v37 = vpack.c.bf16 %v244_v33, %v243_v31  ;;  %v241_v40 = vadd.f32 %v232_v24, %v185_v34  ;;  %v245_v41 = vadd.f32 %v232_v24, %v195_v35 }
  0xe8   :  { %v187_v38 = vpop.f32.mrf.mxu0  ;;  %v197_v39 = vpop.f32.mrf.mxu1 }
  0xe9   :  { %271 = vst [vmem:[%s441_s3] sm:$0xff] %v301_v36  ;;  %273 = vst [vmem:[%s441_s3 + $0x10] sm:$0xff] %v303_v37  ;;  %v242_v42 = vadd.f32 %v236_v25, %v187_v38  ;;  %v246_v43 = vadd.f32 %v236_v25, %v197_v39 }
  0xeb   :  { %v302_v44 = vpack.c.bf16 %v242_v42, %v241_v40  ;;  %v304_v45 = vpack.c.bf16 %v246_v43, %v245_v41 }
  0xed   :  { %272 = vst [vmem:[%s441_s3 + $0x8] sm:$0xff] %v302_v44  ;;  %274 = vst [vmem:[%s441_s3 + $0x18] sm:$0xff] %v304_v45 }

// kernel: transformer_decoder.26
= control target key start
LH: loop header
LB: loop body
LE: loop exit
PB: predicated region body
PF: predicated region fallthrough
CT: control target
= control target key end

     0   :  { %v274_v1 = vmov 0   ;;  %v191_v18 = vlaneseq  ;;  %s355_s1 = inlined_call_operand.vmem [shape: bf16[128,256], index: 1, kind: input, shape index: {}]   ;;  %s356_s0 = inlined_call_operand.vmem [shape: bf16[16,128], index: 0, kind: input, shape index: {}]   ;;  %s357_s2 = inlined_call_operand.vmem [shape: f32[1,256], index: 2, kind: input, shape index: {}]   ;;  %s358_s3 = inlined_call_operand.vmem [shape: bf16[16,256], index: 3, kind: output, shape index: {}]  }
   0x1   :  { %v249_v0 = vld [vmem:[%s355_s1 + $0x74] ss:$8 sps:$4 sm:$0xff]   ;;  %163 = vmatprep.mubr.bf16.mxu0 %v274_v1  ;;  %v251_v2 = vld [vmem:[%s355_s1 + $0x70] ss:$8 sps:$4 sm:$0xff]   ;;  %v252_v3 = vld [vmem:[%s355_s1 + $0x64] ss:$8 sps:$4 sm:$0xff]  }
   0x2   :  { %131 = vmatprep.subr.bf16.mxu0 %v249_v0  ;;  %v254_v4 = vld [vmem:[%s355_s1 + $0x60] ss:$8 sps:$4 sm:$0xff]   ;;  %v255_v5 = vld [vmem:[%s355_s1 + $0x54] ss:$8 sps:$4 sm:$0xff]   ;;  %v257_v6 = vld [vmem:[%s355_s1 + $0x50] ss:$8 sps:$4 sm:$0xff]  }
   0x3   :  { %132 = vmatpush1.bf16.msra.mxu0 %v251_v2  ;;  %v258_v7 = vld [vmem:[%s355_s1 + $0x44] ss:$8 sps:$4 sm:$0xff]   ;;  %v260_v8 = vld [vmem:[%s355_s1 + $0x40] ss:$8 sps:$4 sm:$0xff]   ;;  %v261_v9 = vld [vmem:[%s355_s1 + $0x34] ss:$8 sps:$4 sm:$0xff]  }
   0x4   :  { %133 = vmatprep.subr.bf16.mxu0 %v252_v3  ;;  %v263_v10 = vld [vmem:[%s355_s1 + $0x30] ss:$8 sps:$4 sm:$0xff]   ;;  %v264_v11 = vld [vmem:[%s355_s1 + $0x24] ss:$8 sps:$4 sm:$0xff]   ;;  %v266_v12 = vld [vmem:[%s355_s1 + $0x20] ss:$8 sps:$4 sm:$0xff]  }
   0x5   :  { %v267_v13 = vld [vmem:[%s355_s1 + $0x14] ss:$8 sps:$4 sm:$0xff]   ;;  %v269_v14 = vld [vmem:[%s355_s1 + $0x10] ss:$8 sps:$4 sm:$0xff]   ;;  %v270_v15 = vld [vmem:[%s355_s1 + $0x4] ss:$8 sps:$4 sm:$0xff]  }
   0x6   :  { %v272_v16 = vld [vmem:[%s355_s1] ss:$8 sps:$4 sm:$0xff]   ;;  %v192_v19 = vshrl.u32 %v191_v18, 7 }
   0x7   :  { %134 = vmatpush1.bf16.msra.mxu0 %v254_v4  ;;  %v273_v17 = vld [vmem:[%s356_s0] sm:$0xff]  }
   0x8   :  { %135 = vmatprep.subr.bf16.mxu0 %v255_v5  ;;  %v193_v20 = vsub.s32 0, %v192_v19  ;;  %v189_v21 = vld [vmem:[%s357_s2] sm:$0x3]  ;;  %v197_v22 = vsub.s32 1, %v192_v19 }
   0xa   :  { %v194_v23 = vrot.slane %v189_v21, %v193_v20  ;;  %v198_v24 = vrot.slane %v189_v21, %v197_v22 }
   0xb   :  { %136 = vmatpush1.bf16.msra.mxu0 %v257_v6 }
   0xc   :  { %137 = vmatprep.subr.bf16.mxu0 %v258_v7 }
   0xf   :  { %138 = vmatpush1.bf16.msra.mxu0 %v260_v8 }
  0x10   :  { %139 = vmatprep.subr.bf16.mxu0 %v261_v9 }
  0x13   :  { %140 = vmatpush1.bf16.msra.mxu0 %v263_v10 }
  0x14   :  { %141 = vmatprep.subr.bf16.mxu0 %v264_v11 }
  0x17   :  { %142 = vmatpush1.bf16.msra.mxu0 %v266_v12 }
  0x18   :  { %143 = vmatprep.subr.bf16.mxu0 %v267_v13 }
  0x1b   :  { %144 = vmatpush1.bf16.msra.mxu0 %v269_v14 }
  0x1c   :  { %145 = vmatprep.subr.bf16.mxu0 %v270_v15 }
  0x1f   :  { %146 = vmatpush1.bf16.msra.mxu0 %v272_v16 }
  0x22   :  { %164 = vmatmul.mubr.bf16.vlgmr.msra.gmra.mxu0 %v273_v17 }
  0xe2   :  { %v165_v25 = vpop.f32.mrf.mxu0 }
  0xe3   :  { %v201_v26 = vadd.f32 %v194_v23, %v165_v25 }
  0xe4   :  { %v167_v27 = vpop.f32.mrf.mxu0 }
  0xe5   :  { %v202_v28 = vadd.f32 %v198_v24, %v167_v27  ;;  %v205_v30 = vmax.f32 %v201_v26, 0.0 }
  0xe6   :  { %v169_v29 = vpop.f32.mrf.mxu0 }
  0xe7   :  { %v206_v31 = vmax.f32 %v202_v28, 0.0  ;;  %v203_v32 = vadd.f32 %v194_v23, %v169_v29 }
  0xe8   :  { %v171_v33 = vpop.f32.mrf.mxu0 }
  0xe9   :  { %v246_v34 = vpack.c.bf16 %v206_v31, %v205_v30  ;;  %v204_v35 = vadd.f32 %v198_v24, %v171_v33  ;;  %v207_v36 = vmax.f32 %v203_v32, 0.0 }
  0xeb   :  { %221 = vst [vmem:[%s358_s3] sm:$0xff] %v246_v34  ;;  %v208_v37 = vmax.f32 %v204_v35, 0.0 }
  0xed   :  { %v247_v38 = vpack.c.bf16 %v208_v37, %v207_v36 }
  0xef   :  { %222 = vst [vmem:[%s358_s3 + $0x8] sm:$0xff] %v247_v38 }

// kernel: transformer_decoder.27
= control target key start
LH: loop header
LB: loop body
LE: loop exit
PB: predicated region body
PF: predicated region fallthrough
CT: control target
= control target key end

     0   :  { %s459_s1 = inlined_call_operand.vmem [shape: bf16[256,128], index: 1, kind: input, shape index: {}]   ;;  %s460_s0 = inlined_call_operand.vmem [shape: bf16[16,256], index: 0, kind: input, shape index: {}]   ;;  %s461_s2 = inlined_call_operand.vmem [shape: f32[1,128], index: 2, kind: input, shape index: {}]   ;;  %s462_s3 = inlined_call_operand.vmem [shape: f32[16,128], index: 3, kind: input, shape index: {}]   ;;  %s463_s4 = inlined_call_operand.vmem [shape: f32[1,128], index: 4, kind: input, shape index: {}]   ;;  %s464_s5 = inlined_call_operand.vmem [shape: f32[1,128], index: 5, kind: input, shape index: {}]   ;;  %s465_s6 = inlined_call_operand.vmem [shape: f32[16,128], index: 6, kind: output, shape index: {}]  }
   0x1   :  { %v326_v0 = vld [vmem:[%s459_s1 + $0x78] sm:$0xff]   ;;  %v328_v2 = vld [vmem:[%s459_s1 + $0x70] sm:$0xff]   ;;  %v330_v4 = vld [vmem:[%s459_s1 + $0x68] sm:$0xff]  }
   0x2   :  { %v327_v1 = vld [vmem:[%s459_s1 + $0x38] sm:$0xff]   ;;  %303 = vmatprep.subr.bf16.mxu0 %v326_v0  ;;  %v329_v3 = vld [vmem:[%s459_s1 + $0x30] sm:$0xff]   ;;  %v331_v5 = vld [vmem:[%s459_s1 + $0x28] sm:$0xff]  }
   0x3   :  { %304 = vmatpush3.bf16.msra.mxu0 %v327_v1  ;;  %v332_v6 = vld [vmem:[%s459_s1 + $0x60] sm:$0xff]   ;;  %v334_v8 = vld [vmem:[%s459_s1 + $0x58] sm:$0xff]   ;;  %v336_v10 = vld [vmem:[%s459_s1 + $0x50] sm:$0xff]  }
   0x4   :  { %305 = vmatprep.subr.bf16.mxu0 %v328_v2  ;;  %v333_v7 = vld [vmem:[%s459_s1 + $0x20] sm:$0xff]   ;;  %v335_v9 = vld [vmem:[%s459_s1 + $0x18] sm:$0xff]   ;;  %v337_v12 = vld [vmem:[%s459_s1 + $0x10] sm:$0xff]  }
   0x5   :  { %v344_v11 = vld [vmem:[%s460_s0 + $0x4] ss:$8 sps:$4 sm:$0xff]   ;;  %v342_v17 = vld [vmem:[%s460_s0] ss:$8 sps:$4 sm:$0xff]  }
   0x6   :  { %204 = vmatprep.mubr.bf16.mxu0 %v344_v11  ;;  %v338_v13 = vld [vmem:[%s459_s1 + $0x48] sm:$0xff]   ;;  %v340_v15 = vld [vmem:[%s459_s1 + $0x40] sm:$0xff]  }
   0x7   :  { %306 = vmatpush3.bf16.msra.mxu0 %v329_v3  ;;  %v339_v14 = vld [vmem:[%s459_s1 + $0x8] sm:$0xff]   ;;  %v341_v16 = vld [vmem:[%s459_s1] sm:$0xff]  }
   0x8   :  { %307 = vmatprep.subr.bf16.mxu0 %v330_v4  ;;  %v300_v22 = vld [vmem:[%s461_s2] ss:$0 sm:$0xff]  ;;  %v232_v28 = vld [vmem:[%s462_s3 + $0x8] sm:$0xff] }
   0x9   :  { %v231_v24 = vld [vmem:[%s462_s3] sm:$0xff] }
   0xa   :  { %v301_v46 = vld [vmem:[%s463_s4] ss:$0 sm:$0xff] }
   0xb   :  { %308 = vmatpush3.bf16.msra.mxu0 %v331_v5  ;;  %v302_v48 = vld [vmem:[%s464_s5] ss:$0 sm:$0xff] }
   0xc   :  { %309 = vmatprep.subr.bf16.mxu0 %v332_v6 }
   0xf   :  { %310 = vmatpush3.bf16.msra.mxu0 %v333_v7 }
  0x10   :  { %311 = vmatprep.subr.bf16.mxu0 %v334_v8 }
  0x13   :  { %312 = vmatpush3.bf16.msra.mxu0 %v335_v9 }
  0x14   :  { %313 = vmatprep.subr.bf16.mxu0 %v336_v10 }
  0x17   :  { %314 = vmatpush3.bf16.msra.mxu0 %v337_v12 }
  0x18   :  { %315 = vmatprep.subr.bf16.mxu0 %v338_v13 }
  0x1b   :  { %316 = vmatpush3.bf16.msra.mxu0 %v339_v14 }
  0x1c   :  { %317 = vmatprep.subr.bf16.mxu0 %v340_v15 }
  0x1f   :  { %318 = vmatpush3.bf16.msra.mxu0 %v341_v16 }
  0x22   :  { %205 = vmatmul.mubr.bf16.vlgmr.msra.gmra.mxu0 %v342_v17 }
  0xe2   :  { %v319_v18 = vpop.f32.mrf.mxu0 }
  0xe4   :  { %v320_v19 = vpop.f32.mrf.mxu0 }
  0xe5   :  { %v321_v20 = vadd.f32 %v320_v19, %v319_v18 }
  0xe6   :  { %v322_v21 = vpop.f32.mrf.mxu0 }
  0xe7   :  { %v229_v26 = vadd.f32 %v321_v20, %v300_v22 }
  0xe8   :  { %v323_v23 = vpop.f32.mrf.mxu0 }
  0xe9   :  { %v324_v25 = vadd.f32 %v323_v23, %v322_v21  ;;  %v233_v27 = vadd.f32 %v231_v24, %v229_v26 }
  0xeb   :  { %235 = vadd.xlane.f32.xlu0 %v233_v27  ;;  %v230_v29 = vadd.f32 %v324_v25, %v300_v22 }
  0xed   :  { %v234_v30 = vadd.f32 %v232_v28, %v230_v29 }
  0xef   :  { %237 = vadd.xlane.f32.xlu0 %v234_v30 }
 0x174   :  { %v236_v31 = vpop.xlane.xlu0 %235 }
 0x175   :  { %v240_v32 = vmul.f32 0.0078125, %v236_v31 }
 0x177   :  { %v242_v33 = vsub.f32 %v233_v27, %v240_v32 }
 0x178   :  { %v238_v34 = vpop.xlane.xlu0 %237 }
 0x179   :  { %v241_v35 = vmul.f32 0.0078125, %v238_v34  ;;  %v244_v36 = vmul.f32 %v242_v33, %v242_v33 }
 0x17b   :  { %v243_v37 = vsub.f32 %v234_v30, %v241_v35  ;;  %246 = vadd.xlane.f32.xlu1 %v244_v36 }
 0x17d   :  { %v245_v38 = vmul.f32 %v243_v37, %v243_v37 }
 0x17f   :  { %248 = vadd.xlane.f32.xlu1 %v245_v38 }
 0x204   :  { %v247_v39 = vpop.xlane.xlu1 %246 }
 0x205   :  { %v250_v40 = vmul.f32 0.0078125, %v247_v39 }
 0x207   :  { %v252_v41 = vadd.f32 1e-05, %v250_v40 }
 0x208   :  { %v249_v42 = vpop.xlane.xlu1 %248 }
 0x209   :  { %345 = vrsqrt.f32 %v252_v41  ;;  %v251_v43 = vmul.f32 0.0078125, %v249_v42 }
 0x20b   :  { %v253_v44 = vadd.f32 1e-05, %v251_v43 }
 0x20d   :  { %347 = vrsqrt.f32 %v253_v44 }
 0x216   :  { %v346_v45 = vpop.eup %345 }
 0x217   :  { %v256_v47 = vmul.f32 %v346_v45, %v242_v33 }
 0x219   :  { %v265_v49 = vmul.f32 %v301_v46, %v256_v47 }
 0x21a   :  { %v348_v50 = vpop.eup %347 }
 0x21b   :  { %v274_v51 = vadd.f32 %v302_v48, %v265_v49  ;;  %v257_v52 = vmul.f32 %v348_v50, %v243_v37 }
 0x21d   :  { %276 = vst [vmem:[%s465_s6] sm:$0xff] %v274_v51  ;;  %v266_v53 = vmul.f32 %v301_v46, %v257_v52 }
 0x21f   :  { %v275_v54 = vadd.f32 %v302_v48, %v266_v53 }
 0x221   :  { %277 = vst [vmem:[%s465_s6 + $0x8] sm:$0xff] %v275_v54 }

// kernel: transformer_decoder.37
= control target key start
LH: loop header
LB: loop body
LE: loop exit
PB: predicated region body
PF: predicated region fallthrough
CT: control target
= control target key end

     0   :  { %s107_s0 = inlined_call_operand.vmem [shape: f32[16,128], index: 0, kind: input, shape index: {}]   ;;  %s108_s1 = inlined_call_operand.vmem [shape: f32[1,128], index: 1, kind: input, shape index: {}]   ;;  %s109_s2 = inlined_call_operand.vmem [shape: f32[1,128], index: 2, kind: input, shape index: {}]   ;;  %s110_s3 = inlined_call_operand.vmem [shape: f32[16,128], index: 3, kind: output, shape index: {}]  }
   0x1   :  { %v14_v0 = vld [vmem:[%s107_s0] sm:$0xff]  ;;  %v15_v1 = vld [vmem:[%s107_s0 + $0x8] sm:$0xff] }
   0x2   :  { %16 = vadd.xlane.f32.xlu0 %v14_v0  ;;  %v63_v17 = vld [vmem:[%s108_s1] ss:$0 sm:$0xff] }
   0x3   :  { %v64_v19 = vld [vmem:[%s109_s2] ss:$0 sm:$0xff] }
   0x6   :  { %18 = vadd.xlane.f32.xlu0 %v15_v1 }
  0x8b   :  { %v17_v2 = vpop.xlane.xlu0 %16 }
  0x8c   :  { %v21_v3 = vmul.f32 0.0078125, %v17_v2 }
  0x8e   :  { %v23_v4 = vsub.f32 %v14_v0, %v21_v3 }
  0x8f   :  { %v19_v5 = vpop.xlane.xlu0 %18 }
  0x90   :  { %v22_v6 = vmul.f32 0.0078125, %v19_v5  ;;  %v25_v7 = vmul.f32 %v23_v4, %v23_v4 }
  0x92   :  { %v24_v8 = vsub.f32 %v15_v1, %v22_v6  ;;  %27 = vadd.xlane.f32.xlu1 %v25_v7 }
  0x94   :  { %v26_v9 = vmul.f32 %v24_v8, %v24_v8 }
  0x96   :  { %29 = vadd.xlane.f32.xlu1 %v26_v9 }
 0x11b   :  { %v28_v10 = vpop.xlane.xlu1 %27 }
 0x11c   :  { %v31_v11 = vmul.f32 0.0078125, %v28_v10 }
 0x11e   :  { %v33_v12 = vadd.f32 1e-05, %v31_v11 }
 0x11f   :  { %v30_v13 = vpop.xlane.xlu1 %29 }
 0x120   :  { %65 = vrsqrt.f32 %v33_v12  ;;  %v32_v14 = vmul.f32 0.0078125, %v30_v13 }
 0x122   :  { %v34_v15 = vadd.f32 1e-05, %v32_v14 }
 0x124   :  { %67 = vrsqrt.f32 %v34_v15 }
 0x12d   :  { %v66_v16 = vpop.eup %65 }
 0x12e   :  { %v37_v18 = vmul.f32 %v66_v16, %v23_v4 }
 0x130   :  { %v46_v20 = vmul.f32 %v63_v17, %v37_v18 }
 0x131   :  { %v68_v21 = vpop.eup %67 }
 0x132   :  { %v55_v22 = vadd.f32 %v64_v19, %v46_v20  ;;  %v38_v23 = vmul.f32 %v68_v21, %v24_v8 }
 0x134   :  { %57 = vst [vmem:[%s110_s3] sm:$0xff] %v55_v22  ;;  %v47_v24 = vmul.f32 %v63_v17, %v38_v23 }
 0x136   :  { %v56_v25 = vadd.f32 %v64_v19, %v47_v24 }
 0x138   :  { %58 = vst [vmem:[%s110_s3 + $0x8] sm:$0xff] %v56_v25 }

</bundles_post_ra>
